<compile_context>
chip_gen: v7x
topology: tpu7x:2x2x1
jax: 0.10.0
libtpu: 0.0.40
codegen_flags: <defaults>
</compile_context>

<pallas_src>
import math
from functools import partial

import jax
import jax.numpy as jnp
from jax.experimental import pallas as pl
from jax.experimental.pallas import tpu as pltpu

# ---------------- config (small synthetic shapes) ----------------
BATCH = 2
SEQ = 8
HIDDEN = 32
N_HEADS = 4
N_KV_HEADS = 2
HEAD_DIM = HIDDEN // N_HEADS
N_REP = N_HEADS // N_KV_HEADS
INTER = 64
VOCAB = 64
N_LAYERS = 2
MAX_POS = 16
RMS_EPS = 1e-6
ROPE_BASE = 10000.0

QW = N_HEADS * HEAD_DIM          # 32  (q width)
KW = N_KV_HEADS * HEAD_DIM       # 16  (k / v width)
NBIG = 2 * QW + 3 * KW           # 112 (q, q_rot, k, k_rot, v fused)


def _rmsnorm(x, w):
    var = jnp.mean(x * x, axis=-1, keepdims=True)
    return x * jax.lax.rsqrt(var + RMS_EPS) * w


# ---------------- single fused kernel: embed + L layers + head + CE ----------------
def _fused_kernel(ids_ref, lbl_ref, embed_ref,
                  wqkv_ref, wo_ref, wgu_ref, wd_ref,
                  ln1_ref, ln2_ref, convw_ref, convb_ref,
                  cosq_ref, sinq_ref, cosk_ref, sink_ref,
                  fnorm_ref, lm_ref,
                  h_ref, logit_ref, loss_ref):
    li = pl.program_id(0)
    B, S, D = h_ref.shape

    # ---- token embedding (one-hot matmul on the MXU), first grid step only ----
    @pl.when(li == 0)
    def _():
        iota_v = jax.lax.broadcasted_iota(jnp.int32, (B, S, VOCAB), 2)
        onehot = (iota_v == ids_ref[...]).astype(jnp.float32)          # (B, S, V)
        h0 = jnp.dot(onehot.reshape(B * S, VOCAB), embed_ref[...],
                     preferred_element_type=jnp.float32)               # (B*S, D)
        h_ref[...] = h0.reshape(B, S, D)

    h = h_ref[...]                                                     # (B, S, D) f32, VMEM-resident carry

    # ---- pruning logit: Conv1d(hidden, 1, kernel_size=2) as an MXU matmul ----
    # t[:, s, 0] = tap0 . h[s],  t[:, s, 1] = tap1 . h[s];  logit[s] = t[s,0] + t[s+1,1] + b
    t = jnp.dot(h.reshape(B * S, D), convw_ref[0],
                preferred_element_type=jnp.float32).reshape(B, S, 2)
    logit_ref[li] = (jnp.sum(t[:, :-1, 0:1], axis=-1)
                     + jnp.sum(t[:, 1:, 1:2], axis=-1)
                     + convb_ref[li])                                  # bias scalar from SMEM

    # ---- attention block: RMSNorm + fused QKV(+RoPE cols) + causal GQA SDPA + o_proj ----
    hn = _rmsnorm(h, ln1_ref[0])                                       # (B, S, D) f32
    proj = jnp.dot(hn.reshape(B * S, D).astype(jnp.bfloat16), wqkv_ref[0],
                   preferred_element_type=jnp.float32)                 # (B*S, NBIG) f32
    q = proj[:, 0:QW].reshape(B, S, QW)
    qr = proj[:, QW:2 * QW].reshape(B, S, QW)                          # x @ (wq @ P) == rotate_half(q)
    k = proj[:, 2 * QW:2 * QW + KW].reshape(B, S, KW)
    kr = proj[:, 2 * QW + KW:2 * QW + 2 * KW].reshape(B, S, KW)
    v = proj[:, 2 * QW + 2 * KW:NBIG].reshape(B, S, KW)

    # RoPE (rotate_half folded into weights) -> pure elementwise
    q = q * cosq_ref[...] + qr * sinq_ref[...]
    k = k * cosk_ref[...] + kr * sink_ref[...]

    scale = 1.0 / math.sqrt(HEAD_DIM)
    row = jax.lax.broadcasted_iota(jnp.int32, (S, S), 0)
    col = jax.lax.broadcasted_iota(jnp.int32, (S, S), 1)
    neg = jnp.where(col <= row, 0.0, -1e30)                            # (S, S) additive causal mask
    neg_rep = jnp.concatenate([neg] * N_REP, axis=0)[None]             # (1, N_REP*S, S)

    # per-kv-group attention: rep heads stacked along the query (sublane) axis
    head_outs = []
    for g in range(N_KV_HEADS):                                        # static unroll (2 groups)
        q_cat = jnp.concatenate(
            [q[:, :, (g * N_REP + r) * HEAD_DIM:(g * N_REP + r + 1) * HEAD_DIM]
             for r in range(N_REP)], axis=1).astype(jnp.bfloat16)      # (B, N_REP*S, Dh)
        kg = k[:, :, g * HEAD_DIM:(g + 1) * HEAD_DIM].astype(jnp.bfloat16)
        vg = v[:, :, g * HEAD_DIM:(g + 1) * HEAD_DIM].astype(jnp.bfloat16)
        s = jnp.einsum('bqd,bkd->bqk', q_cat, kg,
                       preferred_element_type=jnp.float32) * scale + neg_rep
        m = jnp.max(s, axis=-1, keepdims=True)
        p = jnp.exp(s - m)                                             # f32 softmax
        p = p / jnp.sum(p, axis=-1, keepdims=True)
        og = jnp.einsum('bqk,bkd->bqd', p.astype(jnp.bfloat16), vg,
                        preferred_element_type=jnp.float32)            # (B, N_REP*S, Dh)
        for r in range(N_REP):
            head_outs.append(og[:, r * S:(r + 1) * S, :])              # head g*N_REP + r
    attn_cat = jnp.concatenate(head_outs, axis=-1)                     # (B, S, QW) head-major
    attn = jnp.dot(attn_cat.reshape(B * S, QW).astype(jnp.bfloat16), wo_ref[0],
                   preferred_element_type=jnp.float32)                 # single o_proj matmul
    h = h + attn.reshape(B, S, D)                                      # residual add

    # ---- MLP block: RMSNorm + fused gate/up + SwiGLU + down ----
    hn2 = _rmsnorm(h, ln2_ref[0])
    gu = jnp.dot(hn2.reshape(B * S, D).astype(jnp.bfloat16), wgu_ref[0],
                 preferred_element_type=jnp.float32)                   # (B*S, 2*INTER) = 128 lanes
    gate = gu[:, :INTER]
    up = gu[:, INTER:]
    act = (gate * jax.lax.logistic(gate)) * up                         # SiLU(gate) * up, f32
    mlp = jnp.dot(act.astype(jnp.bfloat16), wd_ref[0],
                  preferred_element_type=jnp.float32)
    h = h + mlp.reshape(B, S, D)                                       # residual add
    h_ref[...] = h

    # ---- final norm + lm_head + shifted cross-entropy, last grid step only ----
    @pl.when(li == pl.num_programs(0) - 1)
    def _():
        hf = _rmsnorm(h, fnorm_ref[...])
        lg = jnp.dot(hf.reshape(B * S, D).astype(jnp.bfloat16), lm_ref[...],
                     preferred_element_type=jnp.float32).reshape(B, S, VOCAB)
        shift = lg[:, :-1, :]                                          # (B, S-1, V)
        lbl = lbl_ref[...][:, 1:, :]                                   # (B, S-1, 1) int32
        m = jnp.max(shift, axis=-1, keepdims=True)
        lse = jnp.log(jnp.sum(jnp.exp(shift - m), axis=-1, keepdims=True)) + m
        iv = jax.lax.broadcasted_iota(jnp.int32, (B, S - 1, VOCAB), 2)
        gold = jnp.sum(jnp.where(iv == lbl, shift, 0.0), axis=-1, keepdims=True)
        terms = jnp.sum(lse - gold, axis=-1)                           # (B, S-1)
        tot = jnp.sum(jnp.sum(terms, axis=-1, keepdims=True), axis=0, keepdims=True)
        loss_ref[...] = tot * (1.0 / float(B * (S - 1)))               # mean CE


def fused_forward(params, input_ids, labels):
    B, S = input_ids.shape
    D, V, L = HIDDEN, VOCAB, N_LAYERS
    ids3 = input_ids.reshape(B, S, 1).astype(jnp.int32)
    lbl3 = labels.reshape(B, S, 1).astype(jnp.int32)
    h_out, conv_logits, loss = pl.pallas_call(
        _fused_kernel,
        grid=(L,),
        in_specs=[
            pl.BlockSpec((B, S, 1), lambda li: (0, 0, 0)),             # input_ids
            pl.BlockSpec((B, S, 1), lambda li: (0, 0, 0)),             # labels
            pl.BlockSpec((V, D), lambda li: (0, 0)),                   # embedding table
            pl.BlockSpec((1, D, NBIG), lambda li: (li, 0, 0)),         # fused q/q_rot/k/k_rot/v (bf16)
            pl.BlockSpec((1, D, D), lambda li: (li, 0, 0)),            # wo (bf16)
            pl.BlockSpec((1, D, 2 * INTER), lambda li: (li, 0, 0)),    # fused gate/up (bf16)
            pl.BlockSpec((1, INTER, D), lambda li: (li, 0, 0)),        # wd (bf16)
            pl.BlockSpec((1, 1, D), lambda li: (li, 0, 0)),            # ln1
            pl.BlockSpec((1, 1, D), lambda li: (li, 0, 0)),            # ln2
            pl.BlockSpec((1, D, 2), lambda li: (li, 0, 0)),            # conv weight (D, 2)
            pl.BlockSpec(memory_space=pltpu.MemorySpace.SMEM),         # conv bias scalars
            pl.BlockSpec((S, QW), lambda li: (0, 0)),                  # cos (q)
            pl.BlockSpec((S, QW), lambda li: (0, 0)),                  # sin (q)
            pl.BlockSpec((S, KW), lambda li: (0, 0)),                  # cos (k)
            pl.BlockSpec((S, KW), lambda li: (0, 0)),                  # sin (k)
            pl.BlockSpec((1, D), lambda li: (0, 0)),                   # final norm weight
            pl.BlockSpec((D, V), lambda li: (0, 0)),                   # lm_head (bf16)
        ],
        out_specs=[
            pl.BlockSpec((B, S, D), lambda li: (0, 0, 0)),             # hidden carry (resident)
            pl.BlockSpec((L, B, S - 1), lambda li: (0, 0, 0)),         # conv logits (resident)
            pl.BlockSpec((1, 1), lambda li: (0, 0)),                   # CE loss
        ],
        out_shape=[
            jax.ShapeDtypeStruct((B, S, D), jnp.float32),
            jax.ShapeDtypeStruct((L, B, S - 1), jnp.float32),
            jax.ShapeDtypeStruct((1, 1), jnp.float32),
        ],
        compiler_params=pltpu.CompilerParams(dimension_semantics=("arbitrary",)),
    )(ids3, lbl3, params['embed'],
      params['wqkv'], params['wo'], params['wgu'], params['wd'],
      params['ln1'], params['ln2'], params['conv_w'], params['conv_b'],
      params['cosq'], params['sinq'], params['cosk'], params['sink'],
      params['final_norm'], params['lm_head'])
    return loss[0, 0], conv_logits, h_out


# ---------------- model forward (matches reference return signature) ----------------
@partial(jax.jit, static_argnames=("return_logits",))
def model_forward(params, input_ids, labels, return_logits=()):
    loss, conv_logits, _ = fused_forward(params, input_ids, labels)
    logits = [conv_logits[li] if li in return_logits else None for li in range(N_LAYERS)]
    masks = [None] * N_LAYERS                                          # no pruning -> masks are None
    return loss, logits, masks


# ---------------- RoPE tables (precomputed once at init) ----------------
def rope_tables(seq_len, head_dim, base=ROPE_BASE):
    inv_freq = 1.0 / (base ** (jnp.arange(0, head_dim, 2, dtype=jnp.float32) / head_dim))
    t = jnp.arange(seq_len, dtype=jnp.float32)
    freqs = jnp.outer(t, inv_freq)
    emb = jnp.concatenate([freqs, freqs], axis=-1)
    return jnp.cos(emb), jnp.sin(emb)


# ---------------- deterministic parameter init ----------------
def _rotate_half_matrix(dh):
    # P such that x @ P == rotate_half(x) == concat([-x[half:], x[:half]])
    half = dh // 2
    idx = jnp.arange(half)
    P = jnp.zeros((dh, dh), jnp.float32)
    P = P.at[idx + half, idx].set(-1.0)
    P = P.at[idx, idx + half].set(1.0)
    return P


def init_params(key):
    keys = jax.random.split(key, 2 + N_LAYERS)

    def nrm(k, shape, scale=0.05):
        return scale * jax.random.normal(k, shape, dtype=jnp.float32)

    P = _rotate_half_matrix(HEAD_DIM)
    Pq = jnp.kron(jnp.eye(N_HEADS, dtype=jnp.float32), P)
    Pk = jnp.kron(jnp.eye(N_KV_HEADS, dtype=jnp.float32), P)

    wqkv, wo, wgu, wd, ln1, ln2, conv_w, conv_b = [], [], [], [], [], [], [], []
    for li in range(N_LAYERS):
        lk = jax.random.split(keys[2 + li], 8)
        wq = nrm(lk[0], (HIDDEN, QW))
        wk = nrm(lk[1], (HIDDEN, KW))
        wv = nrm(lk[2], (HIDDEN, KW))
        # fold RoPE's rotate_half into extra projection columns
        wqkv.append(jnp.concatenate([wq, wq @ Pq, wk, wk @ Pk, wv], axis=1))
        wo.append(nrm(lk[3], (HIDDEN, HIDDEN)))
        wgu.append(jnp.concatenate([nrm(lk[4], (HIDDEN, INTER)),
                                    nrm(lk[5], (HIDDEN, INTER))], axis=1))
        wd.append(nrm(lk[6], (INTER, HIDDEN)))
        ln1.append(jnp.ones((1, HIDDEN), jnp.float32))
        ln2.append(jnp.ones((1, HIDDEN), jnp.float32))
        conv_w.append(nrm(lk[7], (2, HIDDEN)).T)            # (D, 2): col 0 = tap0, col 1 = tap1
        conv_b.append(0.0)

    cos, sin = rope_tables(max(MAX_POS, SEQ), HEAD_DIM)
    cos, sin = cos[:SEQ], sin[:SEQ]

    return {
        'embed': nrm(keys[0], (VOCAB, HIDDEN)),                          # f32 (exact one-hot lookup)
        'final_norm': jnp.ones((1, HIDDEN), jnp.float32),
        'lm_head': nrm(keys[1], (HIDDEN, VOCAB)).astype(jnp.bfloat16),
        'wqkv': jnp.stack(wqkv).astype(jnp.bfloat16),        # (L, D, NBIG)
        'wo': jnp.stack(wo).astype(jnp.bfloat16),            # (L, D, D)
        'wgu': jnp.stack(wgu).astype(jnp.bfloat16),          # (L, D, 2*INTER)
        'wd': jnp.stack(wd).astype(jnp.bfloat16),            # (L, INTER, D)
        'ln1': jnp.stack(ln1),                               # (L, 1, D) f32
        'ln2': jnp.stack(ln2),                               # (L, 1, D) f32
        'conv_w': jnp.stack(conv_w),                         # (L, D, 2) f32
        'conv_b': jnp.asarray(conv_b, jnp.float32),          # (L,) scalars -> SMEM
        'cosq': jnp.tile(cos, (1, N_HEADS)),                 # (S, QW) f32, precomputed
        'sinq': jnp.tile(sin, (1, N_HEADS)),
        'cosk': jnp.tile(cos, (1, N_KV_HEADS)),               # (S, KW)
        'sink': jnp.tile(sin, (1, N_KV_HEADS)),
    }


if __name__ == "__main__":
    key = jax.random.PRNGKey(0)
    pkey, ikey = jax.random.split(key)
    params = init_params(pkey)
    input_ids = jax.random.randint(ikey, (BATCH, SEQ), 0, VOCAB, dtype=jnp.int32)
    labels = input_ids  # synthetic labels for the CE loss path

    loss, logits, masks = model_forward(params, input_ids, labels, return_logits=(0, 1))
    loss = jax.block_until_ready(loss)
    for lg in logits:
        if lg is not None:
            jax.block_until_ready(lg)

    assert bool(jnp.isfinite(loss)), "loss is not finite"
    assert logits[0].shape == (BATCH, SEQ - 1)
    assert masks[0] is None
    print("KERNEL_OK")
</pallas_src>

<mosaic_0001>
module attributes {stable_mosaic.version = 11 : i64} {
  func.func @_fused_kernel(%arg0: i32, %arg1: memref<2x8x1xi32, #tpu.memory_space<vmem>>, %arg2: memref<2x8x1xi32, #tpu.memory_space<vmem>>, %arg3: memref<64x32xf32, #tpu.memory_space<vmem>>, %arg4: memref<1x32x112xbf16, #tpu.memory_space<vmem>>, %arg5: memref<1x32x32xbf16, #tpu.memory_space<vmem>>, %arg6: memref<1x32x128xbf16, #tpu.memory_space<vmem>>, %arg7: memref<1x64x32xbf16, #tpu.memory_space<vmem>>, %arg8: memref<1x1x32xf32, #tpu.memory_space<vmem>>, %arg9: memref<1x1x32xf32, #tpu.memory_space<vmem>>, %arg10: memref<1x32x2xf32, #tpu.memory_space<vmem>>, %arg11: memref<2xf32, #tpu.memory_space<smem>>, %arg12: memref<8x32xf32, #tpu.memory_space<vmem>>, %arg13: memref<8x32xf32, #tpu.memory_space<vmem>>, %arg14: memref<8x16xf32, #tpu.memory_space<vmem>>, %arg15: memref<8x16xf32, #tpu.memory_space<vmem>>, %arg16: memref<1x32xf32, #tpu.memory_space<vmem>>, %arg17: memref<32x64xbf16, #tpu.memory_space<vmem>>, %arg18: memref<2x8x32xf32, #tpu.memory_space<vmem>>, %arg19: memref<2x2x7xf32, #tpu.memory_space<vmem>>, %arg20: memref<1x1xf32, #tpu.memory_space<vmem>>) attributes {dimension_semantics = [#tpu.dimension_semantics<arbitrary>], iteration_bounds = array<i64: 2>, scalar_prefetch = 0 : i64, scratch_operands = 0 : i64, tpu.core_type = #tpu.core_type<tc>, window_params = [{pipeline_mode = #tpu.pipeline_mode<synchronous>, transform_indices = @transform_0, window_bounds = array<i64: 2, 8, 1>}, {pipeline_mode = #tpu.pipeline_mode<synchronous>, transform_indices = @transform_1, window_bounds = array<i64: 2, 8, 1>}, {pipeline_mode = #tpu.pipeline_mode<synchronous>, transform_indices = @transform_2, window_bounds = array<i64: 64, 32>}, {transform_indices = @transform_3, window_bounds = array<i64: 1, 32, 112>}, {transform_indices = @transform_4, window_bounds = array<i64: 1, 32, 32>}, {transform_indices = @transform_5, window_bounds = array<i64: 1, 32, 128>}, {transform_indices = @transform_6, window_bounds = array<i64: 1, 64, 32>}, {transform_indices = @transform_7, window_bounds = array<i64: 1, 1, 32>}, {transform_indices = @transform_8, window_bounds = array<i64: 1, 1, 32>}, {transform_indices = @transform_9, window_bounds = array<i64: 1, 32, 2>}, {transform_indices = @transform_10, window_bounds = array<i64: 2>}, {pipeline_mode = #tpu.pipeline_mode<synchronous>, transform_indices = @transform_11, window_bounds = array<i64: 8, 32>}, {pipeline_mode = #tpu.pipeline_mode<synchronous>, transform_indices = @transform_12, window_bounds = array<i64: 8, 32>}, {pipeline_mode = #tpu.pipeline_mode<synchronous>, transform_indices = @transform_13, window_bounds = array<i64: 8, 16>}, {pipeline_mode = #tpu.pipeline_mode<synchronous>, transform_indices = @transform_14, window_bounds = array<i64: 8, 16>}, {pipeline_mode = #tpu.pipeline_mode<synchronous>, transform_indices = @transform_15, window_bounds = array<i64: 1, 32>}, {pipeline_mode = #tpu.pipeline_mode<synchronous>, transform_indices = @transform_16, window_bounds = array<i64: 32, 64>}, {pipeline_mode = #tpu.pipeline_mode<synchronous>, transform_indices = @transform_17, window_bounds = array<i64: 2, 8, 32>}, {pipeline_mode = #tpu.pipeline_mode<synchronous>, transform_indices = @transform_18, window_bounds = array<i64: 2, 2, 7>}, {pipeline_mode = #tpu.pipeline_mode<synchronous>, transform_indices = @transform_19, window_bounds = array<i64: 1, 1>}]} {
    %c0_i32 = arith.constant 0 : i32
    %0 = arith.cmpi eq, %arg0, %c0_i32 : i32
    %1 = arith.extui %0 : i1 to i32
    %c0_i32_0 = arith.constant 0 : i32
    %2 = arith.cmpi ne, %1, %c0_i32_0 : i32
    scf.if %2 {
      %177 = tpu.iota {dimensions = array<i32: 2>} : vector<2x8x64xi32>
      %c0_63 = arith.constant 0 : index
      %c0_64 = arith.constant 0 : index
      %c0_65 = arith.constant 0 : index
      %178 = vector.load %arg1[%c0_63, %c0_64, %c0_65] : memref<2x8x1xi32, #tpu.memory_space<vmem>>, vector<2x8x1xi32>
      %179 = vector.broadcast %178 : vector<2x8x1xi32> to vector<2x8x64xi32>
      %180 = arith.cmpi eq, %177, %179 : vector<2x8x64xi32>
      %181 = arith.extui %180 : vector<2x8x64xi1> to vector<2x8x64xi32>
      %182 = arith.sitofp %181 : vector<2x8x64xi32> to vector<2x8x64xf32>
      %183 = vector.shape_cast %182 : vector<2x8x64xf32> to vector<16x64xf32>
      %c0_66 = arith.constant 0 : index
      %c0_67 = arith.constant 0 : index
      %184 = vector.load %arg3[%c0_66, %c0_67] : memref<64x32xf32, #tpu.memory_space<vmem>>, vector<64x32xf32>
      %cst_68 = arith.constant dense<0.000000e+00> : vector<16x32xf32>
      %185 = tpu.matmul %183, %184, %cst_68 {dimension_numbers = #tpu.dot_dimension_numbers<[1], [0], [0], [1], [0, 0, 1, 1], [], []>} : vector<16x64xf32>, vector<64x32xf32>, vector<16x32xf32> -> vector<16x32xf32>
      %186 = vector.shape_cast %185 : vector<16x32xf32> to vector<2x8x32xf32>
      %c0_69 = arith.constant 0 : index
      %c0_70 = arith.constant 0 : index
      %c0_71 = arith.constant 0 : index
      %187 = vector.load %arg18[%c0_69, %c0_70, %c0_71] : memref<2x8x32xf32, #tpu.memory_space<vmem>>, vector<2x8x32xf32>
      tpu.vector_store %arg18[%c0_69, %c0_70, %c0_71], %186 {strides = array<i32>} : memref<2x8x32xf32, #tpu.memory_space<vmem>>, vector<2x8x32xf32>,
    } else {
    }
    %c0 = arith.constant 0 : index
    %c0_1 = arith.constant 0 : index
    %c0_2 = arith.constant 0 : index
    %3 = vector.load %arg18[%c0, %c0_1, %c0_2] : memref<2x8x32xf32, #tpu.memory_space<vmem>>, vector<2x8x32xf32>
    %4 = vector.shape_cast %3 : vector<2x8x32xf32> to vector<16x32xf32>
    %c0_3 = arith.constant 0 : index
    %c0_4 = arith.constant 0 : index
    %c0_5 = arith.constant 0 : index
    %5 = vector.load %arg10[%c0_3, %c0_4, %c0_5] : memref<1x32x2xf32, #tpu.memory_space<vmem>>, vector<1x32x2xf32>
    %6 = vector.shape_cast %5 : vector<1x32x2xf32> to vector<32x2xf32>
    %cst = arith.constant dense<0.000000e+00> : vector<16x2xf32>
    %7 = tpu.matmul %4, %6, %cst {dimension_numbers = #tpu.dot_dimension_numbers<[1], [0], [0], [1], [0, 0, 1, 1], [], []>} : vector<16x32xf32>, vector<32x2xf32>, vector<16x2xf32> -> vector<16x2xf32>
    %8 = vector.shape_cast %7 : vector<16x2xf32> to vector<2x8x2xf32>
    %9 = vector.extract_strided_slice %8 {offsets = [0, 0, 0], sizes = [2, 7, 1], strides = [1, 1, 1]} : vector<2x8x2xf32> to vector<2x7x1xf32>
    %cst_6 = arith.constant dense<0.000000e+00> : vector<2x7xf32>
    %10 = vector.multi_reduction <add>, %9, %cst_6 [2] : vector<2x7x1xf32> to vector<2x7xf32>
    %11 = vector.extract_strided_slice %8 {offsets = [0, 1, 1], sizes = [2, 7, 1], strides = [1, 1, 1]} : vector<2x8x2xf32> to vector<2x7x1xf32>
    %cst_7 = arith.constant dense<0.000000e+00> : vector<2x7xf32>
    %12 = vector.multi_reduction <add>, %11, %cst_7 [2] : vector<2x7x1xf32> to vector<2x7xf32>
    %13 = arith.addf %10, %12 : vector<2x7xf32>
    %14 = arith.index_cast %arg0 : i32 to index
    %15 = memref.load %arg11[%14] : memref<2xf32, #tpu.memory_space<smem>>
    %16 = vector.broadcast %15 : f32 to vector<2x7xf32>
    %17 = arith.addf %13, %16 : vector<2x7xf32>
    %18 = arith.index_cast %arg0 : i32 to index
    %c0_8 = arith.constant 0 : index
    %c0_9 = arith.constant 0 : index
    %19 = vector.load %arg19[%18, %c0_8, %c0_9] : memref<2x2x7xf32, #tpu.memory_space<vmem>>, vector<1x2x7xf32>
    %20 = vector.shape_cast %19 : vector<1x2x7xf32> to vector<2x7xf32>
    %21 = vector.shape_cast %17 : vector<2x7xf32> to vector<1x2x7xf32>
    tpu.vector_store %arg19[%18, %c0_8, %c0_9], %21 {strides = array<i32>} : memref<2x2x7xf32, #tpu.memory_space<vmem>>, vector<1x2x7xf32>,
    %c0_10 = arith.constant 0 : index
    %c0_11 = arith.constant 0 : index
    %c0_12 = arith.constant 0 : index
    %22 = vector.load %arg8[%c0_10, %c0_11, %c0_12] : memref<1x1x32xf32, #tpu.memory_space<vmem>>, vector<1x1x32xf32>
    %23 = vector.shape_cast %22 : vector<1x1x32xf32> to vector<1x32xf32>
    %24 = arith.mulf %3, %3 : vector<2x8x32xf32>
    %cst_13 = arith.constant dense<0.000000e+00> : vector<2x8xf32>
    %25 = vector.multi_reduction <add>, %24, %cst_13 [2] : vector<2x8x32xf32> to vector<2x8xf32>
    %26 = vector.shape_cast %25 : vector<2x8xf32> to vector<2x8x1xf32>
    %cst_14 = arith.constant 3.200000e+01 : f32
    %27 = vector.broadcast %cst_14 : f32 to vector<2x8x1xf32>
    %28 = arith.divf %26, %27 : vector<2x8x1xf32>
    %cst_15 = arith.constant 9.99999997E-7 : f32
    %29 = vector.broadcast %cst_15 : f32 to vector<2x8x1xf32>
    %30 = arith.addf %28, %29 : vector<2x8x1xf32>
    %31 = math.rsqrt %30 : vector<2x8x1xf32>
    %32 = vector.broadcast %31 : vector<2x8x1xf32> to vector<2x8x32xf32>
    %33 = arith.mulf %3, %32 : vector<2x8x32xf32>
    %34 = vector.shape_cast %23 : vector<1x32xf32> to vector<1x1x32xf32>
    %35 = vector.broadcast %34 : vector<1x1x32xf32> to vector<2x8x32xf32>
    %36 = arith.mulf %33, %35 : vector<2x8x32xf32>
    %37 = vector.shape_cast %36 : vector<2x8x32xf32> to vector<16x32xf32>
    %38 = arith.truncf %37 : vector<16x32xf32> to vector<16x32xbf16>
    %c0_16 = arith.constant 0 : index
    %c0_17 = arith.constant 0 : index
    %c0_18 = arith.constant 0 : index
    %39 = vector.load %arg4[%c0_16, %c0_17, %c0_18] : memref<1x32x112xbf16, #tpu.memory_space<vmem>>, vector<1x32x112xbf16>
    %40 = vector.shape_cast %39 : vector<1x32x112xbf16> to vector<32x112xbf16>
    %cst_19 = arith.constant dense<0.000000e+00> : vector<16x112xf32>
    %41 = tpu.matmul %38, %40, %cst_19 {dimension_numbers = #tpu.dot_dimension_numbers<[1], [0], [0], [1], [0, 0, 1, 1], [], []>} : vector<16x32xbf16>, vector<32x112xbf16>, vector<16x112xf32> -> vector<16x112xf32>
    %42 = vector.extract_strided_slice %41 {offsets = [0, 0], sizes = [16, 32], strides = [1, 1]} : vector<16x112xf32> to vector<16x32xf32>
    %43 = vector.shape_cast %42 : vector<16x32xf32> to vector<2x8x32xf32>
    %44 = vector.extract_strided_slice %41 {offsets = [0, 32], sizes = [16, 32], strides = [1, 1]} : vector<16x112xf32> to vector<16x32xf32>
    %45 = vector.shape_cast %44 : vector<16x32xf32> to vector<2x8x32xf32>
    %46 = vector.extract_strided_slice %41 {offsets = [0, 64], sizes = [16, 16], strides = [1, 1]} : vector<16x112xf32> to vector<16x16xf32>
    %47 = vector.shape_cast %46 : vector<16x16xf32> to vector<2x8x16xf32>
    %48 = vector.extract_strided_slice %41 {offsets = [0, 80], sizes = [16, 16], strides = [1, 1]} : vector<16x112xf32> to vector<16x16xf32>
    %49 = vector.shape_cast %48 : vector<16x16xf32> to vector<2x8x16xf32>
    %50 = vector.extract_strided_slice %41 {offsets = [0, 96], sizes = [16, 16], strides = [1, 1]} : vector<16x112xf32> to vector<16x16xf32>
    %51 = vector.shape_cast %50 : vector<16x16xf32> to vector<2x8x16xf32>
    %c0_20 = arith.constant 0 : index
    %c0_21 = arith.constant 0 : index
    %52 = vector.load %arg12[%c0_20, %c0_21] : memref<8x32xf32, #tpu.memory_space<vmem>>, vector<8x32xf32>
    %53 = vector.shape_cast %52 : vector<8x32xf32> to vector<1x8x32xf32>
    %54 = vector.broadcast %53 : vector<1x8x32xf32> to vector<2x8x32xf32>
    %55 = arith.mulf %43, %54 : vector<2x8x32xf32>
    %c0_22 = arith.constant 0 : index
    %c0_23 = arith.constant 0 : index
    %56 = vector.load %arg13[%c0_22, %c0_23] : memref<8x32xf32, #tpu.memory_space<vmem>>, vector<8x32xf32>
    %57 = vector.shape_cast %56 : vector<8x32xf32> to vector<1x8x32xf32>
    %58 = vector.broadcast %57 : vector<1x8x32xf32> to vector<2x8x32xf32>
    %59 = arith.mulf %45, %58 : vector<2x8x32xf32>
    %60 = arith.addf %55, %59 : vector<2x8x32xf32>
    %c0_24 = arith.constant 0 : index
    %c0_25 = arith.constant 0 : index
    %61 = vector.load %arg14[%c0_24, %c0_25] : memref<8x16xf32, #tpu.memory_space<vmem>>, vector<8x16xf32>
    %62 = vector.shape_cast %61 : vector<8x16xf32> to vector<1x8x16xf32>
    %63 = vector.broadcast %62 : vector<1x8x16xf32> to vector<2x8x16xf32>
    %64 = arith.mulf %47, %63 : vector<2x8x16xf32>
    %c0_26 = arith.constant 0 : index
    %c0_27 = arith.constant 0 : index
    %65 = vector.load %arg15[%c0_26, %c0_27] : memref<8x16xf32, #tpu.memory_space<vmem>>, vector<8x16xf32>
    %66 = vector.shape_cast %65 : vector<8x16xf32> to vector<1x8x16xf32>
    %67 = vector.broadcast %66 : vector<1x8x16xf32> to vector<2x8x16xf32>
    %68 = arith.mulf %49, %67 : vector<2x8x16xf32>
    %69 = arith.addf %64, %68 : vector<2x8x16xf32>
    %70 = tpu.iota {dimensions = array<i32: 0>} : vector<8x8xi32>
    %71 = tpu.iota {dimensions = array<i32: 1>} : vector<8x8xi32>
    %72 = arith.cmpi sle, %71, %70 : vector<8x8xi32>
    %cst_28 = arith.constant 0.000000e+00 : f32
    %cst_29 = arith.constant -1.000000e+30 : f32
    %73 = vector.broadcast %cst_28 : f32 to vector<8x8xf32>
    %74 = vector.broadcast %cst_29 : f32 to vector<8x8xf32>
    %75 = arith.select %72, %73, %74 : vector<8x8xi1>, vector<8x8xf32>
    %76 = tpu.concatenate %75, %75 in 0 : vector<8x8xf32>, vector<8x8xf32> -> vector<16x8xf32>
    %77 = vector.shape_cast %76 : vector<16x8xf32> to vector<1x16x8xf32>
    %78 = vector.extract_strided_slice %60 {offsets = [0, 0, 0], sizes = [2, 8, 8], strides = [1, 1, 1]} : vector<2x8x32xf32> to vector<2x8x8xf32>
    %79 = vector.extract_strided_slice %60 {offsets = [0, 0, 8], sizes = [2, 8, 8], strides = [1, 1, 1]} : vector<2x8x32xf32> to vector<2x8x8xf32>
    %80 = tpu.concatenate %78, %79 in 1 : vector<2x8x8xf32>, vector<2x8x8xf32> -> vector<2x16x8xf32>
    %81 = arith.truncf %80 : vector<2x16x8xf32> to vector<2x16x8xbf16>
    %82 = vector.extract_strided_slice %69 {offsets = [0, 0, 0], sizes = [2, 8, 8], strides = [1, 1, 1]} : vector<2x8x16xf32> to vector<2x8x8xf32>
    %83 = arith.truncf %82 : vector<2x8x8xf32> to vector<2x8x8xbf16>
    %84 = vector.extract_strided_slice %51 {offsets = [0, 0, 0], sizes = [2, 8, 8], strides = [1, 1, 1]} : vector<2x8x16xf32> to vector<2x8x8xf32>
    %85 = arith.truncf %84 : vector<2x8x8xf32> to vector<2x8x8xbf16>
    "tpu.trace_start"() <{level = 10 : i32, message = "bqd,bkd->bqk"}> : () -> ()
    %cst_30 = arith.constant dense<0.000000e+00> : vector<2x16x8xf32>
    %86 = tpu.matmul %81, %83, %cst_30 {dimension_numbers = #tpu.dot_dimension_numbers<[2], [2], [1], [1], [0, 0, 0, 1, 1, 1], [0], [0]>} : vector<2x16x8xbf16>, vector<2x8x8xbf16>, vector<2x16x8xf32> -> vector<2x16x8xf32>
    "tpu.trace_stop"() : () -> ()
    %cst_31 = arith.constant 0.353553385 : f32
    %87 = vector.broadcast %cst_31 : f32 to vector<2x16x8xf32>
    %88 = arith.mulf %86, %87 : vector<2x16x8xf32>
    %89 = vector.broadcast %77 : vector<1x16x8xf32> to vector<2x16x8xf32>
    %90 = arith.addf %88, %89 : vector<2x16x8xf32>
    %cst_32 = arith.constant dense<0xFF800000> : vector<2x16xf32>
    %91 = vector.multi_reduction <maximumf>, %90, %cst_32 [2] : vector<2x16x8xf32> to vector<2x16xf32>
    %92 = vector.shape_cast %91 : vector<2x16xf32> to vector<2x16x1xf32>
    %93 = vector.broadcast %92 : vector<2x16x1xf32> to vector<2x16x8xf32>
    %94 = arith.subf %90, %93 : vector<2x16x8xf32>
    %95 = math.exp %94 : vector<2x16x8xf32>
    %cst_33 = arith.constant dense<0.000000e+00> : vector<2x16xf32>
    %96 = vector.multi_reduction <add>, %95, %cst_33 [2] : vector<2x16x8xf32> to vector<2x16xf32>
    %97 = vector.shape_cast %96 : vector<2x16xf32> to vector<2x16x1xf32>
    %98 = vector.broadcast %97 : vector<2x16x1xf32> to vector<2x16x8xf32>
    %99 = arith.divf %95, %98 : vector<2x16x8xf32>
    %100 = arith.truncf %99 : vector<2x16x8xf32> to vector<2x16x8xbf16>
    "tpu.trace_start"() <{level = 10 : i32, message = "bqk,bkd->bqd"}> : () -> ()
    %cst_34 = arith.constant dense<0.000000e+00> : vector<2x16x8xf32>
    %101 = tpu.matmul %100, %85, %cst_34 {dimension_numbers = #tpu.dot_dimension_numbers<[2], [1], [1], [2], [0, 0, 0, 1, 1, 2], [0], [0]>} : vector<2x16x8xbf16>, vector<2x8x8xbf16>, vector<2x16x8xf32> -> vector<2x16x8xf32>
    "tpu.trace_stop"() : () -> ()
    %102 = vector.extract_strided_slice %101 {offsets = [0, 0, 0], sizes = [2, 8, 8], strides = [1, 1, 1]} : vector<2x16x8xf32> to vector<2x8x8xf32>
    %103 = vector.extract_strided_slice %101 {offsets = [0, 8, 0], sizes = [2, 8, 8], strides = [1, 1, 1]} : vector<2x16x8xf32> to vector<2x8x8xf32>
    %104 = vector.extract_strided_slice %60 {offsets = [0, 0, 16], sizes = [2, 8, 8], strides = [1, 1, 1]} : vector<2x8x32xf32> to vector<2x8x8xf32>
    %105 = vector.extract_strided_slice %60 {offsets = [0, 0, 24], sizes = [2, 8, 8], strides = [1, 1, 1]} : vector<2x8x32xf32> to vector<2x8x8xf32>
    %106 = tpu.concatenate %104, %105 in 1 : vector<2x8x8xf32>, vector<2x8x8xf32> -> vector<2x16x8xf32>
    %107 = arith.truncf %106 : vector<2x16x8xf32> to vector<2x16x8xbf16>
    %108 = vector.extract_strided_slice %69 {offsets = [0, 0, 8], sizes = [2, 8, 8], strides = [1, 1, 1]} : vector<2x8x16xf32> to vector<2x8x8xf32>
    %109 = arith.truncf %108 : vector<2x8x8xf32> to vector<2x8x8xbf16>
    %110 = vector.extract_strided_slice %51 {offsets = [0, 0, 8], sizes = [2, 8, 8], strides = [1, 1, 1]} : vector<2x8x16xf32> to vector<2x8x8xf32>
    %111 = arith.truncf %110 : vector<2x8x8xf32> to vector<2x8x8xbf16>
    "tpu.trace_start"() <{level = 10 : i32, message = "bqd,bkd->bqk"}> : () -> ()
    %cst_35 = arith.constant dense<0.000000e+00> : vector<2x16x8xf32>
    %112 = tpu.matmul %107, %109, %cst_35 {dimension_numbers = #tpu.dot_dimension_numbers<[2], [2], [1], [1], [0, 0, 0, 1, 1, 1], [0], [0]>} : vector<2x16x8xbf16>, vector<2x8x8xbf16>, vector<2x16x8xf32> -> vector<2x16x8xf32>
    "tpu.trace_stop"() : () -> ()
    %cst_36 = arith.constant 0.353553385 : f32
    %113 = vector.broadcast %cst_36 : f32 to vector<2x16x8xf32>
    %114 = arith.mulf %112, %113 : vector<2x16x8xf32>
    %115 = vector.broadcast %77 : vector<1x16x8xf32> to vector<2x16x8xf32>
    %116 = arith.addf %114, %115 : vector<2x16x8xf32>
    %cst_37 = arith.constant dense<0xFF800000> : vector<2x16xf32>
    %117 = vector.multi_reduction <maximumf>, %116, %cst_37 [2] : vector<2x16x8xf32> to vector<2x16xf32>
    %118 = vector.shape_cast %117 : vector<2x16xf32> to vector<2x16x1xf32>
    %119 = vector.broadcast %118 : vector<2x16x1xf32> to vector<2x16x8xf32>
    %120 = arith.subf %116, %119 : vector<2x16x8xf32>
    %121 = math.exp %120 : vector<2x16x8xf32>
    %cst_38 = arith.constant dense<0.000000e+00> : vector<2x16xf32>
    %122 = vector.multi_reduction <add>, %121, %cst_38 [2] : vector<2x16x8xf32> to vector<2x16xf32>
    %123 = vector.shape_cast %122 : vector<2x16xf32> to vector<2x16x1xf32>
    %124 = vector.broadcast %123 : vector<2x16x1xf32> to vector<2x16x8xf32>
    %125 = arith.divf %121, %124 : vector<2x16x8xf32>
    %126 = arith.truncf %125 : vector<2x16x8xf32> to vector<2x16x8xbf16>
    "tpu.trace_start"() <{level = 10 : i32, message = "bqk,bkd->bqd"}> : () -> ()
    %cst_39 = arith.constant dense<0.000000e+00> : vector<2x16x8xf32>
    %127 = tpu.matmul %126, %111, %cst_39 {dimension_numbers = #tpu.dot_dimension_numbers<[2], [1], [1], [2], [0, 0, 0, 1, 1, 2], [0], [0]>} : vector<2x16x8xbf16>, vector<2x8x8xbf16>, vector<2x16x8xf32> -> vector<2x16x8xf32>
    "tpu.trace_stop"() : () -> ()
    %128 = vector.extract_strided_slice %127 {offsets = [0, 0, 0], sizes = [2, 8, 8], strides = [1, 1, 1]} : vector<2x16x8xf32> to vector<2x8x8xf32>
    %129 = vector.extract_strided_slice %127 {offsets = [0, 8, 0], sizes = [2, 8, 8], strides = [1, 1, 1]} : vector<2x16x8xf32> to vector<2x8x8xf32>
    %130 = tpu.concatenate %102, %103, %128, %129 in 2 : vector<2x8x8xf32>, vector<2x8x8xf32>, vector<2x8x8xf32>, vector<2x8x8xf32> -> vector<2x8x32xf32>
    %131 = vector.shape_cast %130 : vector<2x8x32xf32> to vector<16x32xf32>
    %132 = arith.truncf %131 : vector<16x32xf32> to vector<16x32xbf16>
    %c0_40 = arith.constant 0 : index
    %c0_41 = arith.constant 0 : index
    %c0_42 = arith.constant 0 : index
    %133 = vector.load %arg5[%c0_40, %c0_41, %c0_42] : memref<1x32x32xbf16, #tpu.memory_space<vmem>>, vector<1x32x32xbf16>
    %134 = vector.shape_cast %133 : vector<1x32x32xbf16> to vector<32x32xbf16>
    %cst_43 = arith.constant dense<0.000000e+00> : vector<16x32xf32>
    %135 = tpu.matmul %132, %134, %cst_43 {dimension_numbers = #tpu.dot_dimension_numbers<[1], [0], [0], [1], [0, 0, 1, 1], [], []>} : vector<16x32xbf16>, vector<32x32xbf16>, vector<16x32xf32> -> vector<16x32xf32>
    %136 = vector.shape_cast %135 : vector<16x32xf32> to vector<2x8x32xf32>
    %137 = arith.addf %3, %136 : vector<2x8x32xf32>
    %c0_44 = arith.constant 0 : index
    %c0_45 = arith.constant 0 : index
    %c0_46 = arith.constant 0 : index
    %138 = vector.load %arg9[%c0_44, %c0_45, %c0_46] : memref<1x1x32xf32, #tpu.memory_space<vmem>>, vector<1x1x32xf32>
    %139 = vector.shape_cast %138 : vector<1x1x32xf32> to vector<1x32xf32>
    %140 = arith.mulf %137, %137 : vector<2x8x32xf32>
    %cst_47 = arith.constant dense<0.000000e+00> : vector<2x8xf32>
    %141 = vector.multi_reduction <add>, %140, %cst_47 [2] : vector<2x8x32xf32> to vector<2x8xf32>
    %142 = vector.shape_cast %141 : vector<2x8xf32> to vector<2x8x1xf32>
    %cst_48 = arith.constant 3.200000e+01 : f32
    %143 = vector.broadcast %cst_48 : f32 to vector<2x8x1xf32>
    %144 = arith.divf %142, %143 : vector<2x8x1xf32>
    %cst_49 = arith.constant 9.99999997E-7 : f32
    %145 = vector.broadcast %cst_49 : f32 to vector<2x8x1xf32>
    %146 = arith.addf %144, %145 : vector<2x8x1xf32>
    %147 = math.rsqrt %146 : vector<2x8x1xf32>
    %148 = vector.broadcast %147 : vector<2x8x1xf32> to vector<2x8x32xf32>
    %149 = arith.mulf %137, %148 : vector<2x8x32xf32>
    %150 = vector.shape_cast %139 : vector<1x32xf32> to vector<1x1x32xf32>
    %151 = vector.broadcast %150 : vector<1x1x32xf32> to vector<2x8x32xf32>
    %152 = arith.mulf %149, %151 : vector<2x8x32xf32>
    %153 = vector.shape_cast %152 : vector<2x8x32xf32> to vector<16x32xf32>
    %154 = arith.truncf %153 : vector<16x32xf32> to vector<16x32xbf16>
    %c0_50 = arith.constant 0 : index
    %c0_51 = arith.constant 0 : index
    %c0_52 = arith.constant 0 : index
    %155 = vector.load %arg6[%c0_50, %c0_51, %c0_52] : memref<1x32x128xbf16, #tpu.memory_space<vmem>>, vector<1x32x128xbf16>
    %156 = vector.shape_cast %155 : vector<1x32x128xbf16> to vector<32x128xbf16>
    %cst_53 = arith.constant dense<0.000000e+00> : vector<16x128xf32>
    %157 = tpu.matmul %154, %156, %cst_53 {dimension_numbers = #tpu.dot_dimension_numbers<[1], [0], [0], [1], [0, 0, 1, 1], [], []>} : vector<16x32xbf16>, vector<32x128xbf16>, vector<16x128xf32> -> vector<16x128xf32>
    %158 = vector.extract_strided_slice %157 {offsets = [0, 0], sizes = [16, 64], strides = [1, 1]} : vector<16x128xf32> to vector<16x64xf32>
    %159 = vector.extract_strided_slice %157 {offsets = [0, 64], sizes = [16, 64], strides = [1, 1]} : vector<16x128xf32> to vector<16x64xf32>
    %160 = arith.negf %158 : vector<16x64xf32>
    %161 = math.exp %160 : vector<16x64xf32>
    %cst_54 = arith.constant 1.000000e+00 : f32
    %162 = vector.broadcast %cst_54 : f32 to vector<16x64xf32>
    %163 = arith.addf %162, %161 : vector<16x64xf32>
    %164 = arith.divf %162, %163 : vector<16x64xf32>
    %165 = arith.mulf %158, %164 : vector<16x64xf32>
    %166 = arith.mulf %165, %159 : vector<16x64xf32>
    %167 = arith.truncf %166 : vector<16x64xf32> to vector<16x64xbf16>
    %c0_55 = arith.constant 0 : index
    %c0_56 = arith.constant 0 : index
    %c0_57 = arith.constant 0 : index
    %168 = vector.load %arg7[%c0_55, %c0_56, %c0_57] : memref<1x64x32xbf16, #tpu.memory_space<vmem>>, vector<1x64x32xbf16>
    %169 = vector.shape_cast %168 : vector<1x64x32xbf16> to vector<64x32xbf16>
    %cst_58 = arith.constant dense<0.000000e+00> : vector<16x32xf32>
    %170 = tpu.matmul %167, %169, %cst_58 {dimension_numbers = #tpu.dot_dimension_numbers<[1], [0], [0], [1], [0, 0, 1, 1], [], []>} : vector<16x64xbf16>, vector<64x32xbf16>, vector<16x32xf32> -> vector<16x32xf32>
    %171 = vector.shape_cast %170 : vector<16x32xf32> to vector<2x8x32xf32>
    %172 = arith.addf %137, %171 : vector<2x8x32xf32>
    %c0_59 = arith.constant 0 : index
    %c0_60 = arith.constant 0 : index
    %c0_61 = arith.constant 0 : index
    %173 = vector.load %arg18[%c0_59, %c0_60, %c0_61] : memref<2x8x32xf32, #tpu.memory_space<vmem>>, vector<2x8x32xf32>
    tpu.vector_store %arg18[%c0_59, %c0_60, %c0_61], %172 {strides = array<i32>} : memref<2x8x32xf32, #tpu.memory_space<vmem>>, vector<2x8x32xf32>,
    %c1_i32 = arith.constant 1 : i32
    %174 = arith.cmpi eq, %arg0, %c1_i32 : i32
    %175 = arith.extui %174 : i1 to i32
    %c0_i32_62 = arith.constant 0 : i32
    %176 = arith.cmpi ne, %175, %c0_i32_62 : i32
    scf.if %176 {
      %c0_63 = arith.constant 0 : index
      %c0_64 = arith.constant 0 : index
      %177 = vector.load %arg16[%c0_63, %c0_64] : memref<1x32xf32, #tpu.memory_space<vmem>>, vector<1x32xf32>
      %178 = arith.mulf %172, %172 : vector<2x8x32xf32>
      %cst_65 = arith.constant dense<0.000000e+00> : vector<2x8xf32>
      %179 = vector.multi_reduction <add>, %178, %cst_65 [2] : vector<2x8x32xf32> to vector<2x8xf32>
      %180 = vector.shape_cast %179 : vector<2x8xf32> to vector<2x8x1xf32>
      %cst_66 = arith.constant 3.200000e+01 : f32
      %181 = vector.broadcast %cst_66 : f32 to vector<2x8x1xf32>
      %182 = arith.divf %180, %181 : vector<2x8x1xf32>
      %cst_67 = arith.constant 9.99999997E-7 : f32
      %183 = vector.broadcast %cst_67 : f32 to vector<2x8x1xf32>
      %184 = arith.addf %182, %183 : vector<2x8x1xf32>
      %185 = math.rsqrt %184 : vector<2x8x1xf32>
      %186 = vector.broadcast %185 : vector<2x8x1xf32> to vector<2x8x32xf32>
      %187 = arith.mulf %172, %186 : vector<2x8x32xf32>
      %188 = vector.shape_cast %177 : vector<1x32xf32> to vector<1x1x32xf32>
      %189 = vector.broadcast %188 : vector<1x1x32xf32> to vector<2x8x32xf32>
      %190 = arith.mulf %187, %189 : vector<2x8x32xf32>
      %191 = vector.shape_cast %190 : vector<2x8x32xf32> to vector<16x32xf32>
      %192 = arith.truncf %191 : vector<16x32xf32> to vector<16x32xbf16>
      %c0_68 = arith.constant 0 : index
      %c0_69 = arith.constant 0 : index
      %193 = vector.load %arg17[%c0_68, %c0_69] : memref<32x64xbf16, #tpu.memory_space<vmem>>, vector<32x64xbf16>
      %cst_70 = arith.constant dense<0.000000e+00> : vector<16x64xf32>
      %194 = tpu.matmul %192, %193, %cst_70 {dimension_numbers = #tpu.dot_dimension_numbers<[1], [0], [0], [1], [0, 0, 1, 1], [], []>} : vector<16x32xbf16>, vector<32x64xbf16>, vector<16x64xf32> -> vector<16x64xf32>
      %195 = vector.shape_cast %194 : vector<16x64xf32> to vector<2x8x64xf32>
      %196 = vector.extract_strided_slice %195 {offsets = [0, 0, 0], sizes = [2, 7, 64], strides = [1, 1, 1]} : vector<2x8x64xf32> to vector<2x7x64xf32>
      %c0_71 = arith.constant 0 : index
      %c0_72 = arith.constant 0 : index
      %c0_73 = arith.constant 0 : index
      %197 = vector.load %arg2[%c0_71, %c0_72, %c0_73] : memref<2x8x1xi32, #tpu.memory_space<vmem>>, vector<2x8x1xi32>
      %198 = vector.extract_strided_slice %197 {offsets = [0, 1, 0], sizes = [2, 7, 1], strides = [1, 1, 1]} : vector<2x8x1xi32> to vector<2x7x1xi32>
      %cst_74 = arith.constant dense<0xFF800000> : vector<2x7xf32>
      %199 = vector.multi_reduction <maximumf>, %196, %cst_74 [2] : vector<2x7x64xf32> to vector<2x7xf32>
      %200 = vector.shape_cast %199 : vector<2x7xf32> to vector<2x7x1xf32>
      %201 = vector.broadcast %200 : vector<2x7x1xf32> to vector<2x7x64xf32>
      %202 = arith.subf %196, %201 : vector<2x7x64xf32>
      %203 = math.exp %202 : vector<2x7x64xf32>
      %cst_75 = arith.constant dense<0.000000e+00> : vector<2x7xf32>
      %204 = vector.multi_reduction <add>, %203, %cst_75 [2] : vector<2x7x64xf32> to vector<2x7xf32>
      %205 = vector.shape_cast %204 : vector<2x7xf32> to vector<2x7x1xf32>
      %206 = math.log %205 : vector<2x7x1xf32>
      %207 = arith.addf %206, %200 : vector<2x7x1xf32>
      %208 = tpu.iota {dimensions = array<i32: 2>} : vector<2x7x64xi32>
      %209 = vector.broadcast %198 : vector<2x7x1xi32> to vector<2x7x64xi32>
      %210 = arith.cmpi eq, %208, %209 : vector<2x7x64xi32>
      %cst_76 = arith.constant 0.000000e+00 : f32
      %211 = vector.broadcast %cst_76 : f32 to vector<2x7x64xf32>
      %212 = arith.select %210, %196, %211 : vector<2x7x64xi1>, vector<2x7x64xf32>
      %cst_77 = arith.constant dense<0.000000e+00> : vector<2x7xf32>
      %213 = vector.multi_reduction <add>, %212, %cst_77 [2] : vector<2x7x64xf32> to vector<2x7xf32>
      %214 = vector.shape_cast %213 : vector<2x7xf32> to vector<2x7x1xf32>
      %215 = arith.subf %207, %214 : vector<2x7x1xf32>
      %cst_78 = arith.constant dense<0.000000e+00> : vector<2x7xf32>
      %216 = vector.multi_reduction <add>, %215, %cst_78 [2] : vector<2x7x1xf32> to vector<2x7xf32>
      %cst_79 = arith.constant dense<0.000000e+00> : vector<2xf32>
      %217 = vector.multi_reduction <add>, %216, %cst_79 [1] : vector<2x7xf32> to vector<2xf32>
      %218 = vector.shape_cast %217 : vector<2xf32> to vector<2x1xf32>
      %cst_80 = arith.constant dense<0.000000e+00> : vector<1xf32>
      %219 = vector.multi_reduction <add>, %218, %cst_80 [0] : vector<2x1xf32> to vector<1xf32>
      %220 = vector.shape_cast %219 : vector<1xf32> to vector<1x1xf32>
      %cst_81 = arith.constant 0.0714285746 : f32
      %221 = vector.broadcast %cst_81 : f32 to vector<1x1xf32>
      %222 = arith.mulf %220, %221 : vector<1x1xf32>
      %c0_82 = arith.constant 0 : index
      %c0_83 = arith.constant 0 : index
      %223 = vector.load %arg20[%c0_82, %c0_83] : memref<1x1xf32, #tpu.memory_space<vmem>>, vector<1x1xf32>
      tpu.vector_store %arg20[%c0_82, %c0_83], %222 {strides = array<i32>} : memref<1x1xf32, #tpu.memory_space<vmem>>, vector<1x1xf32>,
    } else {
    }
    return
  }
  func.func @transform_0(%arg0: i32) -> (i32, i32, i32) {
    %c0_i32 = arith.constant 0 : i32
    %c0_i32_0 = arith.constant 0 : i32
    %c0_i32_1 = arith.constant 0 : i32
    %c0_i32_2 = arith.constant 0 : i32
    return %c0_i32, %c0_i32_0, %c0_i32_1 : i32, i32, i32
  }
  func.func @transform_1(%arg0: i32) -> (i32, i32, i32) {
    %c0_i32 = arith.constant 0 : i32
    %c0_i32_0 = arith.constant 0 : i32
    %c0_i32_1 = arith.constant 0 : i32
    %c0_i32_2 = arith.constant 0 : i32
    return %c0_i32, %c0_i32_0, %c0_i32_1 : i32, i32, i32
  }
  func.func @transform_2(%arg0: i32) -> (i32, i32) {
    %c0_i32 = arith.constant 0 : i32
    %c0_i32_0 = arith.constant 0 : i32
    %c0_i32_1 = arith.constant 0 : i32
    return %c0_i32, %c0_i32_0 : i32, i32
  }
  func.func @transform_3(%arg0: i32) -> (i32, i32, i32) {
    %c0_i32 = arith.constant 0 : i32
    %c0_i32_0 = arith.constant 0 : i32
    %c0_i32_1 = arith.constant 0 : i32
    return %arg0, %c0_i32, %c0_i32_0 : i32, i32, i32
  }
  func.func @transform_4(%arg0: i32) -> (i32, i32, i32) {
    %c0_i32 = arith.constant 0 : i32
    %c0_i32_0 = arith.constant 0 : i32
    %c0_i32_1 = arith.constant 0 : i32
    return %arg0, %c0_i32, %c0_i32_0 : i32, i32, i32
  }
  func.func @transform_5(%arg0: i32) -> (i32, i32, i32) {
    %c0_i32 = arith.constant 0 : i32
    %c0_i32_0 = arith.constant 0 : i32
    %c0_i32_1 = arith.constant 0 : i32
    return %arg0, %c0_i32, %c0_i32_0 : i32, i32, i32
  }
  func.func @transform_6(%arg0: i32) -> (i32, i32, i32) {
    %c0_i32 = arith.constant 0 : i32
    %c0_i32_0 = arith.constant 0 : i32
    %c0_i32_1 = arith.constant 0 : i32
    return %arg0, %c0_i32, %c0_i32_0 : i32, i32, i32
  }
  func.func @transform_7(%arg0: i32) -> (i32, i32, i32) {
    %c0_i32 = arith.constant 0 : i32
    %c0_i32_0 = arith.constant 0 : i32
    %c0_i32_1 = arith.constant 0 : i32
    return %arg0, %c0_i32, %c0_i32_0 : i32, i32, i32
  }
  func.func @transform_8(%arg0: i32) -> (i32, i32, i32) {
    %c0_i32 = arith.constant 0 : i32
    %c0_i32_0 = arith.constant 0 : i32
    %c0_i32_1 = arith.constant 0 : i32
    return %arg0, %c0_i32, %c0_i32_0 : i32, i32, i32
  }
  func.func @transform_9(%arg0: i32) -> (i32, i32, i32) {
    %c0_i32 = arith.constant 0 : i32
    %c0_i32_0 = arith.constant 0 : i32
    %c0_i32_1 = arith.constant 0 : i32
    return %arg0, %c0_i32, %c0_i32_0 : i32, i32, i32
  }
  func.func @transform_10(%arg0: i32) -> i32 {
    %c0_i32 = arith.constant 0 : i32
    %c0_i32_0 = arith.constant 0 : i32
    return %c0_i32 : i32
  }
  func.func @transform_11(%arg0: i32) -> (i32, i32) {
    %c0_i32 = arith.constant 0 : i32
    %c0_i32_0 = arith.constant 0 : i32
    %c0_i32_1 = arith.constant 0 : i32
    return %c0_i32, %c0_i32_0 : i32, i32
  }
  func.func @transform_12(%arg0: i32) -> (i32, i32) {
    %c0_i32 = arith.constant 0 : i32
    %c0_i32_0 = arith.constant 0 : i32
    %c0_i32_1 = arith.constant 0 : i32
    return %c0_i32, %c0_i32_0 : i32, i32
  }
  func.func @transform_13(%arg0: i32) -> (i32, i32) {
    %c0_i32 = arith.constant 0 : i32
    %c0_i32_0 = arith.constant 0 : i32
    %c0_i32_1 = arith.constant 0 : i32
    return %c0_i32, %c0_i32_0 : i32, i32
  }
  func.func @transform_14(%arg0: i32) -> (i32, i32) {
    %c0_i32 = arith.constant 0 : i32
    %c0_i32_0 = arith.constant 0 : i32
    %c0_i32_1 = arith.constant 0 : i32
    return %c0_i32, %c0_i32_0 : i32, i32
  }
  func.func @transform_15(%arg0: i32) -> (i32, i32) {
    %c0_i32 = arith.constant 0 : i32
    %c0_i32_0 = arith.constant 0 : i32
    %c0_i32_1 = arith.constant 0 : i32
    return %c0_i32, %c0_i32_0 : i32, i32
  }
  func.func @transform_16(%arg0: i32) -> (i32, i32) {
    %c0_i32 = arith.constant 0 : i32
    %c0_i32_0 = arith.constant 0 : i32
    %c0_i32_1 = arith.constant 0 : i32
    return %c0_i32, %c0_i32_0 : i32, i32
  }
  func.func @transform_17(%arg0: i32) -> (i32, i32, i32) {
    %c0_i32 = arith.constant 0 : i32
    %c0_i32_0 = arith.constant 0 : i32
    %c0_i32_1 = arith.constant 0 : i32
    %c0_i32_2 = arith.constant 0 : i32
    return %c0_i32, %c0_i32_0, %c0_i32_1 : i32, i32, i32
  }
  func.func @transform_18(%arg0: i32) -> (i32, i32, i32) {
    %c0_i32 = arith.constant 0 : i32
    %c0_i32_0 = arith.constant 0 : i32
    %c0_i32_1 = arith.constant 0 : i32
    %c0_i32_2 = arith.constant 0 : i32
    return %c0_i32, %c0_i32_0, %c0_i32_1 : i32, i32, i32
  }
  func.func @transform_19(%arg0: i32) -> (i32, i32) {
    %c0_i32 = arith.constant 0 : i32
    %c0_i32_0 = arith.constant 0 : i32
    %c0_i32_1 = arith.constant 0 : i32
    return %c0_i32, %c0_i32_0 : i32, i32
  }
}

</mosaic_0001>

<bundles_post_ra>
// kernel: model_forward.1
= control target key start
LH: loop header
LB: loop body
LE: loop exit
PB: predicated region body
PF: predicated region fallthrough
CT: control target
= control target key end

     0   :  { %s3287_s0 = inlined_call_operand.vmem [shape: s32[2,8,1], index: 0, kind: input, shape index: {}]   ;;  %s3288_s1 = inlined_call_operand.vmem [shape: s32[2,8,1], index: 1, kind: input, shape index: {}]   ;;  %s3289_s2 = inlined_call_operand.vmem [shape: f32[64,32], index: 2, kind: input, shape index: {}]   ;;  %s3290_s3 = inlined_call_operand.vmem [shape: bf16[2,32,112], index: 3, kind: input, shape index: {}]   ;;  %s3291_s4 = inlined_call_operand.vmem [shape: bf16[2,32,32], index: 4, kind: input, shape index: {}]   ;;  %s3292_s5 = inlined_call_operand.vmem [shape: bf16[2,32,128], index: 5, kind: input, shape index: {}]   ;;  %s3293_s6 = inlined_call_operand.vmem [shape: bf16[2,64,32], index: 6, kind: input, shape index: {}]   ;;  %s3294_s7 = inlined_call_operand.vmem [shape: f32[2,1,32], index: 7, kind: input, shape index: {}]   ;;  %s3295_s8 = inlined_call_operand.vmem [shape: f32[2,1,32], index: 8, kind: input, shape index: {}]   ;;  %s3296_s9 = inlined_call_operand.vmem [shape: f32[2,32,2], index: 9, kind: input, shape index: {}]   ;;  %s3297_s10 = inlined_call_operand.vmem [shape: f32[2], index: 10, kind: input, shape index: {}]   ;;  %s3298_s11 = inlined_call_operand.vmem [shape: f32[8,32], index: 11, kind: input, shape index: {}]   ;;  %s3299_s12 = inlined_call_operand.vmem [shape: f32[8,32], index: 12, kind: input, shape index: {}]   ;;  %s3300_s13 = inlined_call_operand.vmem [shape: f32[8,16], index: 13, kind: input, shape index: {}]   ;;  %s3301_s14 = inlined_call_operand.vmem [shape: f32[8,16], index: 14, kind: input, shape index: {}]   ;;  %s3302_s15 = inlined_call_operand.vmem [shape: f32[1,32], index: 15, kind: input, shape index: {}]   ;;  %s3303_s16 = inlined_call_operand.vmem [shape: bf16[32,64], index: 16, kind: input, shape index: {}]   ;;  %s3304_s17 = inlined_call_operand.hbm [shape: f32[2,8,32], index: 17, kind: output, shape index: {0}]   ;;  %s3305_s18 = inlined_call_operand.vmem [shape: f32[2,2,7], index: 18, kind: output, shape index: {1}]   ;;  %s3306_s19 = inlined_call_operand.hbm [shape: f32[1,1], index: 19, kind: output, shape index: {2}]  }
   0x1   :  { %3314 = sst [smem:[#allocation12_spill]] %s3287_s0 }
   0x2   :  { %3315 = sst [smem:[#allocation13_spill]] %s3288_s1 }
   0x3   :  { %3316 = sst [smem:[#allocation14_spill]] %s3289_s2 }
   0x4   :  { %3317 = sst [smem:[#allocation15_spill]] %s3290_s3 }
   0x5   :  { %3318 = sst [smem:[#allocation16_spill]] %s3291_s4 }
   0x6   :  { %3319 = sst [smem:[#allocation17_spill]] %s3292_s5 }
   0x7   :  { %3320 = sst [smem:[#allocation18_spill]] %s3297_s10 }
   0x8   :  { %3321 = sst [smem:[#allocation19_spill]] %s3302_s15 }
   0x9   :  { %3322 = sst [smem:[#allocation20_spill]] %s3303_s16 }
   0xa   :  { %3323 = sst [smem:[#allocation21_spill]] %s3304_s17 }
   0xb   :  { %3324 = sst [smem:[#allocation22_spill]] %s3306_s19 }
   0xc   :  { %25 = vsyncpa [#allocation4], 0 }
   0xd   :  { %26 = vsyncpa [#allocation3], 0 }
   0xe   :  { %27 = vsyncpa [#allocation7], 0  ;;  %s2861_s0 = smov 0  }
   0xf LB: > { %3325 = sst [smem:[#allocation11_spill]] %s2735_s0  ;;  %s2867_s30 = sadd.s32 4294967295, %s2735_s0   ;;  %s2735_s0 = sphi %s2861_s0, %s33_s0  }
  0x10   : > { %p2239_p0 = scmp.ge.s32.totalorder %s2735_s0, 1  ;;  %p493_p1 = scmp.lt.s32.totalorder %s2735_s0, 3 }
  0x11   : > { %s3326_s10 = sld [smem:[#allocation18_spill]]  ;;  %p2515_p4 = scmp.eq.s32.totalorder %s2867_s30, 0 }
  0x12   : > { %p2875_p3 = pnand %p2239_p0, %p493_p1 }
  0x14   : > { %p2511_p5 = pneg %p2875_p3 }
  0x16   : > { %p2512_p6 = pnand %p2515_p4, %p2511_p5 }
  0x17   : > { %s515_s1 = sshll.u32 %s3326_s10, 4  ;;  %s516_s1 = int_to_ptr.vmem [resolvable:$true] %s515_s1 }
  0x18   : > { %s2650_s2 = scalar_lea.vmem %s516_s1, 16  ;;  %p2652_p8 = pneg %p2512_p6 }
  0x19   : > { %p2651_p7 = scmp.ne.s32.totalorder %s516_s1, %s2650_s2  ;;  %p2658_p11 = scmp.lt.s32.totalorder %s516_s1, %s516_s1 }
  0x1a   : > { %p2659_p12 = scmp.lt.s32.totalorder %s2650_s2, %s2650_s2 }
  0x1b   : > { %p2653_p9 = pnand %p2652_p8, %p2651_p7 }
  0x1c   : > { %p2660_p13 = por %p2659_p12, %p2658_p11 }
  0x1d   : > { %p2654_p10 = pneg %p2653_p9 }
  0x1f   : > { %p2661_p2 = pnand %p2660_p13, %p2654_p10 }
  0x21   : > { %2664 = shalt.err (!%p2661_p2)
}
  0x22   : > { %s2737_s23 = smov [#allocation2]   ;;  %598 = sbr.rel (%p2875_p3) target bundleno = 4451 (0x1163), region = 88 }
  0x23   : > { %2514 = dma.vmem_to_smem (!%p2512_p6), %s516_s1, 16, %s2737_s23, [#allocation4]  }
  0x29   : > { %2722 = dma.done.wait (%p2515_p4), [#allocation4], 16  }
  0x2a   : > { %2724 = vsyncadd (%p2515_p4), [#allocation4], 4294967280 }
  0x2b   : > { %604 = sfence }
  0x2c   : > { %p676_p0 = scmp.lt.s32.totalorder %s2867_s30, 1  ;;  %s3328_s28 = sld [smem:[#allocation15_spill]] }
  0x2d   : > { %s3329_s4 = sld [smem:[#allocation16_spill]]  ;;  %s3330_s5 = sld [smem:[#allocation17_spill]] }
  0x2e   : > { %s2892_s24 = scalar_select %p676_p0, %s2867_s30, 1 }
  0x2f   : > { %p3331_p1 = scmp.ne.s32.totalorder %s2867_s30, 0 }
  0x30   : > { %s2299_s25 = sshll.u32 %s2892_s24, 4  ;;  %s2302_s3 = sshll.u32 %s2892_s24, 5  ;;  %v2738_v2 = vmov (!%p3331_p1), 0   ;;  %v712_v15 = vlaneseq (!%p3331_p1)  ;;  %vm736_vm0 = vcmask (!%p3331_p1), 523264   ;;  %v2739_v18 = vmov (!%p3331_p1), 0.0  }
  0x31   : > { %s2914_s19 = scalar_lea.vmem %s3293_s6, %s2302_s3  ;;  %s698_s26 = scalar_lea.vmem %s3294_s7, %s2892_s24  ;;  %2553 = vset.pattern.permute.xlu0 (!%p3331_p1), %v2738_v2  ;;  %vm818_vm3 = vcmask (!%p3331_p1), 261120  }
  0x32   : > { %s2899_s29 = scalar_lea.vmem %s3328_s28, %s2299_s25  ;;  %s701_s20 = scalar_lea.vmem %s3295_s8, %s2892_s24  ;;  %v713_v16 = vand.u32 (!%p3331_p1), 127, %v712_v15 }
  0x33   : > { %s2904_s1 = scalar_lea.vmem %s3329_s4, %s2299_s25  ;;  %s2909_s23 = scalar_lea.vmem %s3330_s5, %s2299_s25 }
  0x34   : > { %s2927_s16 = scalar_lea.vmem %s3296_s9, %s2302_s3  ;;  %711 = sbr.rel (%p3331_p1) target bundleno = 408 (0x198), region = 96 }
  0x35   : > { %s3332_s0 = sld [smem:[#allocation12_spill]] (!%p3331_p1)  ;;  %s3334_s15 = sld [smem:[#allocation14_spill]] (!%p3331_p1) }
  0x3b   : > { %s3333_s22 = smov %s3332_s0  ;;  %v714_v0 = vld [vmem:[%s3332_s0] sm:$0xff]  ;;  %v729_v3 = vld [vmem:[%s3334_s15 + $0x8] sm:$0xff]  ;;  %v730_v4 = vld [vmem:[%s3334_s15 + $0x10] sm:$0xff] }
  0x3c   : > { %v728_v1 = vld [vmem:[%s3334_s15] sm:$0xff]  ;;  %v731_v5 = vld [vmem:[%s3334_s15 + $0x18] sm:$0xff]  ;;  %717 = vperm.xlu0 %2553, %v714_v0   ;;  %v715_v8 = vld [vmem:[%s3333_s22 + $0x8] sm:$0xff] }
  0x3d   : > { %v2475_v6 = vpack.c.bf16 %v729_v3, %v728_v1  ;;  %v2479_v7 = vpack.c.bf16 %v731_v5, %v730_v4  ;;  %v732_v9 = vld [vmem:[%s3334_s15 + $0x20] sm:$0xff]  ;;  %v733_v10 = vld [vmem:[%s3334_s15 + $0x28] sm:$0xff]  ;;  %v734_v12 = vld [vmem:[%s3334_s15 + $0x30] sm:$0xff] }
  0x3e   : > { %v2483_v11 = vpack.c.bf16 %v733_v10, %v732_v9  ;;  %v735_v13 = vld [vmem:[%s3334_s15 + $0x38] sm:$0xff] }
  0x3f   : > { %2476 = vmatprep.subr.bf16.mxu0 %v2475_v6  ;;  %v2487_v14 = vpack.c.bf16 %v735_v13, %v734_v12 }
  0x40   : > { %2478 = vmatpush3.bf16.msra.mxu0 %v2475_v6  ;;  %720 = vperm.xlu0 %2553, %v715_v8  }
  0x41   : > { %2480 = vmatprep.subr.bf16.mxu0 %v2479_v7 }
  0x44   : > { %2482 = vmatpush3.bf16.msra.mxu0 %v2479_v7 }
  0x45   : > { %2484 = vmatprep.subr.bf16.mxu0 %v2483_v11 }
  0x48   : > { %2486 = vmatpush3.bf16.msra.mxu0 %v2483_v11 }
  0x49   : > { %2488 = vmatprep.subr.bf16.mxu0 %v2487_v14 }
  0x4c   : > { %2490 = vmatpush3.bf16.msra.mxu0 %v2487_v14 }
  0xbb   : > { %v718_v17 = vpop.permute.xlu0 %717 }
  0xbc   : > { %vm722_vm1 = vcmp.eq.s32.totalorder %v713_v16, %v718_v17 }
  0xbd   : > { %v2255_v19 = vsel %vm722_vm1, 1.0, %v2739_v18 }
  0xbe   : > { %2369 = vmatprep.mubr.msk.f32.mxu0 %vm736_vm0, %v2255_v19 }
  0xbf   : > { %v721_v20 = vpop.permute.xlu0 %720 }
  0xc0   : > { %vm723_vm2 = vcmp.eq.s32.totalorder %v713_v16, %v721_v20 }
  0xc1   : > { %v2256_v21 = vsel %vm723_vm2, 1.0, %v2739_v18 }
  0xc2   : > { %2370 = vmatmul.mubr.msk.f32.vlgmr.msra.gmra.mrb[0].mxu0 %vm736_vm0, %v2256_v21 }
 0x195   : > { %v2371_v22 = vpop.f32.mrb[0].mxu0 }
 0x196   : > { %820 = vst.msk [vmem:[#allocation5 + $0x8] sm:$0xff] %vm818_vm3, %v2371_v22  ;;  %v809_v23 = vpop.f32.mrb[1].mxu0 }
 0x197   : > { %819 = vst.msk [vmem:[#allocation5] sm:$0xff] %vm818_vm3, %v809_v23 }
 0x198 PF: > { %vm827_vm4 = vcmask 261120   ;;  %v823_v30 = vld [vmem:[%s2927_s16] sm:$0xff]  ;;  %v824_v31 = vld [vmem:[%s2927_s16 + $0x8] sm:$0xff]  ;;  %v825_v33 = vld [vmem:[%s2927_s16 + $0x10] sm:$0xff]  ;;  %v2740_v37 = vmov 0.0   ;;  %vm2741_vm5 = vmmov 0  }
 0x199   : > { %v2491_v32 = vpack.c.bf16 %v824_v31, %v823_v30  ;;  %v826_v34 = vld [vmem:[%s2927_s16 + $0x18] sm:$0xff]  ;;  %v2576_v36 = vld [vmem:[%s2899_s29] sm:$0xff]   ;;  %2391 = vmatprep.subr.bf16.mxu0 %v2740_v37  ;;  %v2577_v38 = vld [vmem:[%s2899_s29 + $0x8] sm:$0xff]   ;;  %2393 = vmatprep.mubr.msk.bf16.mxu0 %vm2741_vm5, %v2740_v37  ;;  %s2742_s10 = smov 80   ;;  %s2743_s2 = smov 64   ;;  %vm1104_vm6 = vcmask 64512  }
 0x19a   : > { %v2495_v35 = vpack.c.bf16 %v826_v34, %v825_v33  ;;  %v1066_v39 = vld [vmem:[%s3301_s14] sm:$0xff]  ;;  %s2744_s17 = smov 32   ;;  %s2746_s3 = smov 96   ;;  %vm1262_vm8 = vcmask 1043456   ;;  %vm1639_vm9 = vcmask 130048   ;;  %vm1642_vm10 = vcmask 195584  }
 0x19b   : > { %2492 = vmatprep.subr.bf16.mxu1 %v2491_v32  ;;  %v1059_v40 = vld [vmem:[%s3300_s13] sm:$0xff]  ;;  %1068 = vrot.lane.b32.xlu1 %v1066_v39, %s2742_s10  ;;  %s2747_s21 = smov 120   ;;  %s2749_s25 = smov 56   ;;  %vm1851_vm11 = vcmask 523264   ;;  %vm945_vm12 = vcmask 1041409   ;;  %vm950_vm13 = vcmask 50176  }
 0x19c   : > { %2494 = vmatpush3.bf16.msra.mxu1 %v2491_v32  ;;  %v1042_v41 = vld [vmem:[%s3299_s12] sm:$0xff]  ;;  %v935_v32 = vlaneseq  ;;  %s2750_s5 = smov 24   ;;  %s2751_s10 = smov 8  }
 0x19d   : > { %v2963_v25 = vld [vmem:[#allocation5 + $0x8] sm:$0xff]  ;;  %2496 = vmatprep.subr.bf16.mxu1 %v2495_v35  ;;  %v2262_v51 = vld [vmem:[%s698_s26] ss:$0 sm:$0xff]  ;;  %s2745_s26 = smov 112   ;;  %s2752_s29 = smov 16  }
 0x19e   : > { %v2961_v24 = vld [vmem:[#allocation5] sm:$0xff]  ;;  %v954_v27 = vmul.f32 %v2963_v25, %v2963_v25  ;;  %v3055_v33 = vand.u32 127, %v935_v32  ;;  %v3057_v34 = vshrl.u32 %v935_v32, 7  ;;  %s2754_s24 = smov 127   ;;  %p2288_p2 = scmp.ne.s32.totalorder %s2867_s30, 1 }
 0x19f   : > { %v953_v26 = vmul.f32 %v2961_v24, %v2961_v24  ;;  %2380 = vmatprep.mubr.msk.f32.mxu1 %vm827_vm4, %v2961_v24  ;;  %1044 = vrot.lane.b32.xlu1 %v1042_v41, %s2744_s17  ;;  %v1039_v13 = vld [vmem:[%s3298_s11] sm:$0xff]  ;;  %vm2756_vm14 = vmmov (!%p2288_p2), 0   ;;  %vm1992_vm15 = vcmask (!%p2288_p2), 522240   ;;  %vm2033_vm1 = vcmask (!%p2288_p2), 523265  }
 0x1a0   : > { %v958_v29 = vsel %vm827_vm4, %v954_v27, 0.0  ;;  %2498 = vmatpush3.bf16.msra.mxu1 %v2495_v35  ;;  %vm1085_vm7 = vcmp.le.s32.totalorder %v3055_v33, %v3057_v34  ;;  %vm2071_vm3 = vcmask (!%p2288_p2), 1041408  }
 0x1a1   : > { %v955_v28 = vsel %vm827_vm4, %v953_v26, 0.0  ;;  %2383 = vmatprep.subr.bf16.mxu1 %v2740_v37 }
 0x1a2   : > { %956 = vadd.xlane.f32.xlu0 %v955_v28 }
 0x1a3   : > { %2381 = vmatmul.mubr.msk.f32.vlgmr.msra.gmra.mrb[0].mxu1 %vm827_vm4, %v2963_v25 }
 0x1a4   : > { %2384 = vmatpush3.bf16.msra.mxu1 %v2576_v36  ;;  %2387 = vmatprep.mubr.msk.bf16.mxu1 %vm2741_vm5, %v2740_v37 }
 0x1a5   : > { %2385 = vmatprep.subr.bf16.mxu1 %v2740_v37 }
 0x1a6   : > { %959 = vadd.xlane.f32.xlu0 %v958_v29 }
 0x1a8   : > { %2386 = vmatpush3.bf16.msra.mxu1 %v2577_v38  ;;  %v2748_v38 = vmov -1e+30  }
 0x1a9   : > { %2397 = vmatprep.subr.bf16.mxu1 %v2740_v37  ;;  %v3061_v39 = vsel %vm1085_vm7, 0.0, %v2748_v38 }
 0x1bc   : > { %1061 = vrot.lane.b32.xlu0 %v1059_v40, %s2743_s2 }
 0x20d   : > { %v1069_v58 = vpop.permute.xlu1 %1068 }
 0x211   : > { %v1045_v1 = vpop.permute.xlu1 %1044 }
 0x22f   : > { %v957_v42 = vpop.xlane.xlu0 %956 }
 0x230   : > { %v962_v43 = vmul.f32 0.03125, %v957_v42 }
 0x232   : > { %v964_v44 = vadd.f32 1e-06, %v962_v43 }
 0x233   : > { %v960_v45 = vpop.xlane.xlu0 %959 }
 0x234   : > { %2586 = vrsqrt.f32 %v964_v44  ;;  %v963_v46 = vmul.f32 0.03125, %v960_v45 }
 0x236   : > { %v965_v47 = vadd.f32 1e-06, %v963_v46 }
 0x237   : > { %v1062_v4 = vpop.permute.xlu0 %1061 }
 0x238   : > { %2588 = vrsqrt.f32 %v965_v47 }
 0x23e   : > { %v2587_v48 = vpop.eup %2586 }
 0x23f   : > { %v968_v49 = vmul.f32 %v2587_v48, %v2961_v24 }
 0x241   : > { %v976_v53 = vmul.f32 %v2262_v51, %v968_v49 }
 0x242   : > { %v2589_v50 = vpop.eup %2588 }
 0x243   : > { %v969_v52 = vmul.f32 %v2589_v50, %v2963_v25 }
 0x245   : > { %v977_v54 = vmul.f32 %v2262_v51, %v969_v52 }
 0x247   : > { %v978_v55 = vpack.c.bf16 %v977_v54, %v976_v53 }
 0x249   : > { %2388 = vmatmul.mubr.msk.bf16.vlgmr.msra.gmra.mrb[4].mxu1 %vm827_vm4, %v978_v55 }
 0x24a   : > { %2399 = vmatprep.mubr.msk.bf16.mxu1 %vm2741_vm5, %v2740_v37 }
 0x276   : > { %v3010_v56 = vpop.f32.mrb[0].mxu1 }
 0x277   : > { %v3012_v57 = vpop.f32.mrb[1].mxu1 }
 0x31c   : > { %v3014_v59 = vpop.f32.mrb[4].mxu1 }
 0x31d   : > { %v2389_v60 = vpop.f32.mrb[5].mxu1  ;;  %v1071_v61 = vmul.f32 %v1069_v58, %v3014_v59  ;;  %v1047_v2 = vmul.f32 %v1045_v1, %v3014_v59  ;;  %v1064_v5 = vmul.f32 %v1062_v4, %v3014_v59  ;;  %v1040_v15 = vmul.f32 %v1039_v13, %v3014_v59 }
 0x31e   : > { %v3017_v62 = vpop.f32.mrb[6].mxu1 }
 0x31f   : > { %1075 = vrot.lane.b32.xlu1 %v1071_v61, %s2745_s26  ;;  %v2390_v63 = vpop.f32.mrb[7].mxu1  ;;  %v1072_v0 = vmul.f32 %v1069_v58, %v3017_v62  ;;  %v1048_v3 = vmul.f32 %v1045_v1, %v3017_v62  ;;  %v1065_v9 = vmul.f32 %v1062_v4, %v3017_v62  ;;  %v1041_v16 = vmul.f32 %v1039_v13, %v3017_v62 }
 0x320   : > { %v3073_v61 = vpack.c.bf16 %v3017_v62, %v3017_v62  ;;  %v3079_v63 = vpack.c.bf16 %v3014_v59, %v3014_v59 }
 0x323   : > { %1077 = vrot.lane.b32.xlu1 %v1072_v0, %s2745_s26 }
 0x327   : > { %1051 = vrot.lane.b32.xlu1 %v1047_v2, %s2746_s3 }
 0x32b   : > { %1053 = vrot.lane.b32.xlu1 %v1048_v3, %s2746_s3 }
 0x391   : > { %v1076_v6 = vpop.permute.xlu1 %1075 }
 0x392   : > { %v1081_v7 = vadd.f32 %v1076_v6, %v1064_v5 }
 0x394   : > { %v3025_v8 = vpack.c.bf16 %v1081_v7, %v1081_v7 }
 0x395   : > { %v1078_v10 = vpop.permute.xlu1 %1077 }
 0x396   : > { %v1082_v11 = vadd.f32 %v1078_v10, %v1065_v9  ;;  %1102 = vrot.lane.b32.xlu1 %v3025_v8, %s2743_s2 }
 0x398   : > { %v3030_v12 = vpack.c.bf16 %v1082_v11, %v1082_v11 }
 0x399   : > { %v1052_v14 = vpop.permute.xlu1 %1051 }
 0x39a   : > { %1153 = vrot.lane.b32.xlu1 %v3030_v12, %s2743_s2  ;;  %v1057_v18 = vadd.f32 %v1052_v14, %v1040_v15 }
 0x39d   : > { %v1054_v17 = vpop.permute.xlu1 %1053 }
 0x39e   : > { %v1058_v19 = vadd.f32 %v1054_v17, %v1041_v16 }
 0x3a0   : > { %v2554_v20 = vpack.i.bf16 %v1058_v19, %v1057_v18 }
 0x3a2   : > { %2555 = vrot.lane.b32.xlu0 %v2554_v20, %s2747_s21 }
 0x408   : > { %v1103_v21 = vpop.permute.xlu1 %1102 }
 0x409   : > { %v1109_v22 = vsel %vm1104_vm6, %v1103_v21, 0 }
 0x40a   : > { %2392 = vmatpush3.bf16.xpose.msra.mxu0 %v1109_v22 }
 0x40b   : > { %2403 = vmatprep.subr.bf16.mxu0 %v2740_v37 }
 0x40c   : > { %v1154_v23 = vpop.permute.xlu1 %1153 }
 0x40d   : > { %v1159_v26 = vsel %vm1104_vm6, %v1154_v23, 0 }
 0x40e   : > { %2398 = vmatpush3.bf16.xpose.msra.mxu1 %v1159_v26 }
 0x40f   : > { %2409 = vmatprep.subr.bf16.mxu1 %v2740_v37 }
 0x414   : > { %v2556_v27 = vpop.permute.xlu0 %2555 }
 0x415   : > { %v2558_v28 = vunpack.i.h.bf16 %v2556_v27  ;;  %v2557_v29 = vunpack.i.l.bf16 %v2556_v27 }
 0x417   : > { %v3043_v30 = vpack.c.bf16 %v2558_v28, %v1058_v19  ;;  %v3045_v31 = vpack.c.bf16 %v2557_v29, %v1057_v18 }
 0x419   : > { %2394 = vmatmul.mubr.msk.bf16.vlgmr.msra.gmra.mrb[0].mxu0 %vm1104_vm6, %v3045_v31  ;;  %2400 = vmatmul.mubr.msk.bf16.vlgmr.msra.gmra.mrb[8].mxu1 %vm1104_vm6, %v3043_v30 }
 0x41a   : > { %2405 = vmatprep.mubr.msk.bf16.mxu0 %vm2741_vm5, %v2740_v37  ;;  %2411 = vmatprep.mubr.msk.bf16.mxu1 %vm2741_vm5, %v2740_v37 }
 0x4ec   : > { %v1145_v35 = vpop.f32.mrb[0].mxu0  ;;  %v1195_v36 = vpop.f32.mrb[8].mxu1 }
 0x4ed   : > { %v1202_v40 = vmul.f32 0.35355338, %v1145_v35  ;;  %v2395_v41 = vpop.f32.mrb[1].mxu0  ;;  %v2401_v42 = vpop.f32.mrb[9].mxu1  ;;  %v1204_v43 = vmul.f32 0.35355338, %v1195_v36 }
 0x4ee   : > { %v1148_v44 = vpop.f32.mrb[2].mxu0  ;;  %v1198_v45 = vpop.f32.mrb[10].mxu1 }
 0x4ef   : > { %v1203_v46 = vmul.f32 0.35355338, %v1148_v44  ;;  %v1205_v47 = vmul.f32 0.35355338, %v1198_v45  ;;  %v2396_v48 = vpop.f32.mrb[3].mxu0  ;;  %v2402_v49 = vpop.f32.mrb[11].mxu1  ;;  %v1206_v50 = vadd.f32 %v1202_v40, %v3061_v39  ;;  %v1208_v55 = vadd.f32 %v1204_v43, %v3061_v39 }
 0x4f1   : > { %v1210_v51 = vsel %vm1104_vm6, %v1206_v50, -inf  ;;  %v1207_v52 = vadd.f32 %v1203_v46, %v3061_v39  ;;  %v1209_v53 = vadd.f32 %v1205_v47, %v3061_v39  ;;  %v1216_v60 = vsel %vm1104_vm6, %v1208_v55, -inf }
 0x4f2   : > { %1211 = vmax.xlane.f32.xlu1 %v1210_v51 }
 0x4f3   : > { %v1213_v54 = vsel %vm1104_vm6, %v1207_v52, -inf  ;;  %v1219_v58 = vsel %vm1104_vm6, %v1209_v53, -inf }
 0x4f4   : > { %1214 = vmax.xlane.f32.xlu0 %v1213_v54 }
 0x4f6   : > { %1220 = vmax.xlane.f32.xlu1 %v1219_v58 }
 0x4f8   : > { %1217 = vmax.xlane.f32.xlu0 %v1216_v60 }
 0x507   : > { %1308 = vrot.lane.b32.xlu1 %v3073_v61, %s2744_s17 }
 0x50e   : > { %1257 = vrot.lane.b32.xlu0 %v3079_v63, %s2744_s17 }
 0x57f   : > { %v1212_v0 = vpop.xlane.xlu1 %1211 }
 0x580   : > { %v1222_v1 = vsub.f32 %v1206_v50, %v1212_v0 }
 0x581   : > { %v1215_v2 = vpop.xlane.xlu0 %1214 }
 0x582   : > { %v1226_v3 = vmul.f32 1.442695, %v1222_v1  ;;  %v1223_v4 = vsub.f32 %v1207_v52, %v1215_v2 }
 0x583   : > { %v1221_v5 = vpop.xlane.xlu1 %1220 }
 0x584   : > { %2590 = vpow2.f32 %v1226_v3  ;;  %v1228_v6 = vmul.f32 1.442695, %v1223_v4  ;;  %v1225_v62 = vsub.f32 %v1209_v53, %v1221_v5 }
 0x585   : > { %v1218_v7 = vpop.xlane.xlu0 %1217 }
 0x586   : > { %2592 = vpow2.f32 %v1228_v6  ;;  %v1232_v9 = vmul.f32 1.442695, %v1225_v62  ;;  %v1224_v10 = vsub.f32 %v1208_v55, %v1218_v7 }
 0x587   : > { %v1309_v11 = vpop.permute.xlu1 %1308 }
 0x588   : > { %2594 = vpow2.f32 %v1232_v9  ;;  %v1230_v59 = vmul.f32 1.442695, %v1224_v10  ;;  %v1314_v13 = vsel %vm1262_vm8, %v1309_v11, 0 }
 0x589   : > { %v1258_v14 = vpop.permute.xlu0 %1257  ;;  %2410 = vmatpush3.bf16.msra.mxu1 %v1314_v13 }
 0x58a   : > { %2596 = vpow2.f32 %v1230_v59  ;;  %v1264_v15 = vsel %vm1262_vm8, %v1258_v14, 0  ;;  %2421 = vmatprep.subr.bf16.mxu1 %v2740_v37 }
 0x58b   : > { %2404 = vmatpush3.bf16.msra.mxu0 %v1264_v15 }
 0x58c   : > { %2415 = vmatprep.subr.bf16.mxu0 %v2740_v37 }
 0x58e   : > { %v2591_v16 = vpop.eup %2590 }
 0x58f   : > { %v1234_v17 = vsel %vm1104_vm6, %v2591_v16, 0.0 }
 0x590   : > { %v2593_v18 = vpop.eup %2592  ;;  %1235 = vadd.xlane.f32.xlu0 %v1234_v17 }
 0x591   : > { %v1237_v19 = vsel %vm1104_vm6, %v2593_v18, 0.0 }
 0x592   : > { %v2595_v20 = vpop.eup %2594  ;;  %1238 = vadd.xlane.f32.xlu1 %v1237_v19 }
 0x593   : > { %v1243_v23 = vsel %vm1104_vm6, %v2595_v20, 0.0 }
 0x594   : > { %v2597_v21 = vpop.eup %2596 }
 0x595   : > { %v1240_v22 = vsel %vm1104_vm6, %v2597_v21, 0.0 }
 0x596   : > { %1241 = vadd.xlane.f32.xlu0 %v1240_v22  ;;  %1244 = vadd.xlane.f32.xlu1 %v1243_v23 }
 0x5a7   : > { %1360 = vrot.lane.b32.xlu1 %v3025_v8, %s2749_s25 }
 0x5ab   : > { %1358 = vrot.lane.b32.xlu1 %v3045_v31, %s2745_s26 }
 0x5ac   : > { %1412 = vrot.lane.b32.xlu0 %v3030_v12, %s2749_s25  ;;  %s3336_s25 = sld [smem:[#allocation13_spill]] (!%p2288_p2) }
 0x5b0   : > { %1410 = vrot.lane.b32.xlu0 %v3043_v30, %s2745_s26  ;;  %s3335_s26 = sld [smem:[#allocation20_spill]] (!%p2288_p2) }
 0x61d   : > { %v1236_v26 = vpop.xlane.xlu0 %1235 }
 0x61e   : > { %2598 = vrcp.f32 %v1236_v26 }
 0x61f   : > { %v1239_v27 = vpop.xlane.xlu1 %1238 }
 0x620   : > { %2600 = vrcp.f32 %v1239_v27 }
 0x623   : > { %v1242_v28 = vpop.xlane.xlu0 %1241  ;;  %v1245_v29 = vpop.xlane.xlu1 %1244 }
 0x624   : > { %2602 = vrcp.f32 %v1242_v28 }
 0x625   : > { %2604 = vrcp.f32 %v1245_v29 }
 0x627   : > { %v1361_v38 = vpop.permute.xlu1 %1360  ;;  %v1413_v43 = vpop.permute.xlu0 %1412 }
 0x628   : > { %v2599_v32 = vpop.eup %2598  ;;  %v1366_v42 = vsel %vm1104_vm6, %v1361_v38, 0  ;;  %v1418_v45 = vsel %vm1104_vm6, %v1413_v43, 0 }
 0x629   : > { %v1247_v36 = vmul.f32 %v2599_v32, %v2591_v16 }
 0x62a   : > { %v2601_v35 = vpop.eup %2600 }
 0x62b   : > { %v1249_v8 = vmul.f32 %v2601_v35, %v2593_v18  ;;  %v1359_v46 = vpop.permute.xlu1 %1358  ;;  %v1411_v47 = vpop.permute.xlu0 %1410 }
 0x62d   : > { %v1254_v40 = vpack.c.bf16 %v1249_v8, %v1247_v36 }
 0x62e   : > { %v2603_v31 = vpop.eup %2602 }
 0x62f   : > { %v2605_v41 = vpop.eup %2604  ;;  %v1251_v12 = vmul.f32 %v2603_v31, %v2597_v21  ;;  %2406 = vmatmul.mubr.msk.bf16.vlgmr.msra.gmra.mrb[4].mxu0 %vm1104_vm6, %v1254_v40 }
 0x630   : > { %v1253_v30 = vmul.f32 %v2605_v41, %v2595_v20  ;;  %2416 = vmatpush3.bf16.xpose.msra.mxu0 %v1366_v42  ;;  %2417 = vmatprep.mubr.msk.bf16.mxu0 %vm2741_vm5, %v2740_v37 }
 0x631   : > { %2427 = vmatprep.subr.bf16.mxu0 %v2740_v37 }
 0x632   : > { %v1255_v44 = vpack.c.bf16 %v1253_v30, %v1251_v12 }
 0x634   : > { %2412 = vmatmul.mubr.msk.bf16.vlgmr.msra.gmra.mrb[12].mxu1 %vm1104_vm6, %v1255_v44 }
 0x635   : > { %2422 = vmatpush3.bf16.xpose.msra.mxu1 %v1418_v45  ;;  %2423 = vmatprep.mubr.msk.bf16.mxu1 %vm2741_vm5, %v2740_v37 }
 0x636   : > { %2433 = vmatprep.subr.bf16.mxu1 %v2740_v37 }
 0x637   : > { %2418 = vmatmul.mubr.msk.bf16.vlgmr.msra.gmra.mrb[8].mxu0 %vm1104_vm6, %v1359_v46 }
 0x638   : > { %2429 = vmatprep.mubr.msk.bf16.mxu0 %vm2741_vm5, %v2740_v37 }
 0x63c   : > { %2424 = vmatmul.mubr.msk.bf16.vlgmr.msra.gmra.mrb[16].mxu1 %vm1104_vm6, %v1411_v47 }
 0x63d   : > { %2435 = vmatprep.mubr.msk.bf16.mxu1 %vm2741_vm5, %v2740_v37 }
 0x702   : > { %v3113_v48 = vpop.f32.mrb[4].mxu0 }
 0x703   : > { %v2407_v49 = vpop.f32.mrb[5].mxu0 }
 0x704   : > { %v1303_v50 = vpop.f32.mrb[6].mxu0 }
 0x705   : > { %v2408_v51 = vpop.f32.mrb[7].mxu0 }
 0x707   : > { %v3115_v52 = vpop.f32.mrb[12].mxu1 }
 0x708   : > { %v2413_v53 = vpop.f32.mrb[13].mxu1 }
 0x709   : > { %v1353_v54 = vpop.f32.mrb[14].mxu1 }
 0x70a   : > { %v2559_v55 = vpack.i.bf16 %v1353_v54, %v1303_v50  ;;  %v2414_v58 = vpop.f32.mrb[15].mxu1  ;;  %v1402_v60 = vpop.f32.mrb[8].mxu0 }
 0x70b   : > { %v1461_v0 = vmul.f32 0.35355338, %v1402_v60  ;;  %v2419_v1 = vpop.f32.mrb[9].mxu0 }
 0x70c   : > { %v1405_v2 = vpop.f32.mrb[10].mxu0 }
 0x70d   : > { %v1462_v3 = vmul.f32 0.35355338, %v1405_v2  ;;  %v2420_v4 = vpop.f32.mrb[11].mxu0  ;;  %v1465_v5 = vadd.f32 %v1461_v0, %v3061_v39  ;;  %v2578_v2 = vld [vmem:[%s2904_s1] sm:$0xff]  }
 0x70f   : > { %v1454_v6 = vpop.f32.mrb[16].mxu1  ;;  %v1469_v62 = vsel %vm1104_vm6, %v1465_v5, -inf  ;;  %v1466_v7 = vadd.f32 %v1462_v3, %v3061_v39  ;;  %v2579_v3 = vld [vmem:[%s2904_s1 + $0x8] sm:$0xff]   ;;  %s3337_s1 = sld [smem:[#allocation19_spill]] (!%p2288_p2) }
 0x710   : > { %v1463_v9 = vmul.f32 0.35355338, %v1454_v6  ;;  %v2425_v10 = vpop.f32.mrb[17].mxu1  ;;  %1470 = vmax.xlane.f32.xlu1 %v1469_v62 }
 0x711   : > { %v1457_v11 = vpop.f32.mrb[18].mxu1  ;;  %v1472_v59 = vsel %vm1104_vm6, %v1466_v7, -inf }
 0x712   : > { %v1464_v13 = vmul.f32 0.35355338, %v1457_v11  ;;  %v2426_v14 = vpop.f32.mrb[19].mxu1  ;;  %1473 = vmax.xlane.f32.xlu0 %v1472_v59  ;;  %v1467_v15 = vadd.f32 %v1463_v9, %v3061_v39 }
 0x714   : > { %v1468_v16 = vadd.f32 %v1464_v13, %v3061_v39  ;;  %v1475_v17 = vsel %vm1104_vm6, %v1467_v15, -inf }
 0x716   : > { %1476 = vmax.xlane.f32.xlu0 %v1475_v17  ;;  %v1478_v18 = vsel %vm1104_vm6, %v1468_v16, -inf }
 0x717   : > { %1479 = vmax.xlane.f32.xlu1 %v1478_v18 }
 0x79d   : > { %v1471_v19 = vpop.xlane.xlu1 %1470 }
 0x79e   : > { %v1481_v20 = vsub.f32 %v1465_v5, %v1471_v19 }
 0x79f   : > { %v1474_v21 = vpop.xlane.xlu0 %1473 }
 0x7a0   : > { %v1485_v22 = vmul.f32 1.442695, %v1481_v20  ;;  %v1482_v23 = vsub.f32 %v1466_v7, %v1474_v21 }
 0x7a2   : > { %2606 = vpow2.f32 %v1485_v22  ;;  %v1487_v26 = vmul.f32 1.442695, %v1482_v23 }
 0x7a3   : > { %v1477_v27 = vpop.xlane.xlu0 %1476 }
 0x7a4   : > { %2608 = vpow2.f32 %v1487_v26  ;;  %v1483_v28 = vsub.f32 %v1467_v15, %v1477_v27  ;;  %v1480_v29 = vpop.xlane.xlu1 %1479 }
 0x7a5   : > { %v1484_v32 = vsub.f32 %v1468_v16, %v1480_v29 }
 0x7a6   : > { %v1489_v35 = vmul.f32 1.442695, %v1483_v28 }
 0x7a7   : > { %v1491_v39 = vmul.f32 1.442695, %v1484_v32 }
 0x7a8   : > { %2610 = vpow2.f32 %v1489_v35 }
 0x7a9   : > { %2612 = vpow2.f32 %v1491_v39 }
 0x7ac   : > { %v2607_v36 = vpop.eup %2606 }
 0x7ad   : > { %v1493_v8 = vsel %vm1104_vm6, %v2607_v36, 0.0 }
 0x7ae   : > { %v2609_v38 = vpop.eup %2608  ;;  %1494 = vadd.xlane.f32.xlu0 %v1493_v8 }
 0x7af   : > { %v1496_v40 = vsel %vm1104_vm6, %v2609_v38, 0.0 }
 0x7b0   : > { %1497 = vadd.xlane.f32.xlu1 %v1496_v40 }
 0x7b2   : > { %v2611_v31 = vpop.eup %2610 }
 0x7b3   : > { %v2613_v41 = vpop.eup %2612  ;;  %v1499_v12 = vsel %vm1104_vm6, %v2611_v31, 0.0 }
 0x7b4   : > { %1500 = vadd.xlane.f32.xlu0 %v1499_v12  ;;  %v1502_v42 = vsel %vm1104_vm6, %v2613_v41, 0.0 }
 0x7b5   : > { %1503 = vadd.xlane.f32.xlu1 %v1502_v42  ;;  %v2581_v42 = vld [vmem:[%s2909_s23 + $0x8] sm:$0xff]  }
 0x7c6   : > { %1564 = vrot.lane.b32.xlu1 %v3073_v61, %s2750_s5 }
 0x7ca   : > { %2560 = vrot.lane.b32.xlu1 %v2559_v55, %s2751_s10  ;;  %1515 = vrot.lane.b32.xlu0 %v3079_v63, %s2750_s5 }
 0x83b   : > { %v1495_v30 = vpop.xlane.xlu0 %1494 }
 0x83c   : > { %2614 = vrcp.f32 %v1495_v30 }
 0x83d   : > { %v1498_v43 = vpop.xlane.xlu1 %1497 }
 0x83e   : > { %2616 = vrcp.f32 %v1498_v43 }
 0x841   : > { %v1501_v44 = vpop.xlane.xlu0 %1500 }
 0x842   : > { %2618 = vrcp.f32 %v1501_v44  ;;  %v1504_v45 = vpop.xlane.xlu1 %1503 }
 0x843   : > { %2620 = vrcp.f32 %v1504_v45 }
 0x845   : > { %v1516_v46 = vpop.permute.xlu0 %1515 }
 0x846   : > { %v2615_v47 = vpop.eup %2614  ;;  %v1521_v49 = vsel %vm1262_vm8, %v1516_v46, 0  ;;  %v1565_v50 = vpop.permute.xlu1 %1564 }
 0x847   : > { %v1570_v61 = vsel %vm1262_vm8, %v1565_v50, 0  ;;  %2428 = vmatpush3.bf16.msra.mxu0 %v1521_v49  ;;  %v1506_v63 = vmul.f32 %v2615_v47, %v2607_v36 }
 0x848   : > { %v2617_v51 = vpop.eup %2616  ;;  %2434 = vmatpush3.bf16.msra.mxu1 %v1570_v61  ;;  %2439 = vmatprep.subr.bf16.mxu0 %v2740_v37  ;;  %v2277_v61 = vld [vmem:[%s701_s20] ss:$0 sm:$0xff]  ;;  %s2261_s20 = sshll.u32 %s2867_s30, 1 }
 0x849   : > { %v1508_v53 = vmul.f32 %v2617_v51, %v2609_v38  ;;  %2447 = vmatprep.subr.bf16.mxu1 %v2740_v37  ;;  %s949_s17 = scalar_lea.vmem %s3305_s18, %s2261_s20 }
 0x84a   : > { %v2561_v14 = vpop.permute.xlu1 %2560 }
 0x84b   : > { %v1513_v54 = vpack.c.bf16 %v1508_v53, %v1506_v63  ;;  %v2563_v15 = vunpack.i.h.bf16 %v2561_v14  ;;  %v2562_v16 = vunpack.i.l.bf16 %v2561_v14 }
 0x84c   : > { %v2619_v55 = vpop.eup %2618 }
 0x84d   : > { %v2621_v58 = vpop.eup %2620  ;;  %v1510_v60 = vmul.f32 %v2619_v55, %v2611_v31  ;;  %2430 = vmatmul.mubr.msk.bf16.vlgmr.msra.gmra.mrb[12].mxu0 %vm1104_vm6, %v1513_v54  ;;  %v1638_v20 = vsel %vm1104_vm6, %v3115_v52, %v2563_v15  ;;  %v1637_v21 = vsel %vm1104_vm6, %v3113_v48, %v2562_v16  ;;  %v2582_v55 = vld [vmem:[%s2914_s19] sm:$0xff]  }
 0x84e   : > { %v1512_v0 = vmul.f32 %v2621_v58, %v2613_v41  ;;  %2443 = vmatprep.mubr.msk.bf16.mxu0 %vm2741_vm5, %v2740_v37  ;;  %2440 = vmatpush3.bf16.msra.mxu0 %v2578_v2  ;;  %v2583_v58 = vld [vmem:[%s2914_s19 + $0x8] sm:$0xff]  }
 0x84f   : > { %2441 = vmatprep.subr.bf16.mxu0 %v2740_v37 }
 0x850   : > { %v1514_v1 = vpack.c.bf16 %v1512_v0, %v1510_v60  ;;  %v2584_v60 = vld [vmem:[%s2914_s19 + $0x10] sm:$0xff]   ;;  %v2585_v0 = vld [vmem:[%s2914_s19 + $0x18] sm:$0xff]   ;;  %s923_s19 = sld [smem:[#allocation2 + %s2867_s30]] }
 0x852   : > { %2436 = vmatmul.mubr.msk.bf16.vlgmr.msra.gmra.mrb[20].mxu1 %vm1104_vm6, %v1514_v1  ;;  %2442 = vmatpush3.bf16.msra.mxu0 %v2579_v3  ;;  %v2753_v1 = vmov 0  }
 0x853   : > { %2451 = vmatprep.mubr.msk.bf16.mxu1 %vm2741_vm5, %v2740_v37  ;;  %2455 = vmatprep.subr.bf16.mxu0 %v2740_v37 }
 0x854   : > { %2574 = vset.pattern.permute.xlu0 %v2753_v1  ;;  %2575 = vset.pattern.permute.xlu1 %v2753_v1 }
 0x920   : > { %v1557_v4 = vpop.f32.mrb[12].mxu0 }
 0x921   : > { %v2431_v5 = vpop.f32.mrb[13].mxu0 }
 0x922   : > { %v1560_v6 = vpop.f32.mrb[14].mxu0  ;;  %v913_v5 = vrot.slane %v3012_v57, 1 }
 0x923   : > { %v2432_v62 = vpop.f32.mrb[15].mxu0 }
 0x924   : > { %v914_v62 = vrot.slane %v3010_v56, 1 }
 0x925   : > { %v1606_v7 = vpop.f32.mrb[20].mxu1 }
 0x926   : > { %v2564_v9 = vpack.i.bf16 %v1606_v7, %v1557_v4  ;;  %v2437_v10 = vpop.f32.mrb[21].mxu1 }
 0x927   : > { %v1609_v11 = vpop.f32.mrb[22].mxu1 }
 0x928   : > { %v2569_v59 = vpack.i.bf16 %v1609_v11, %v1560_v6  ;;  %2565 = vrot.lane.b32.xlu0 %v2564_v9, %s2752_s29  ;;  %v2438_v13 = vpop.f32.mrb[23].mxu1 }
 0x92a   : > { %2570 = vrot.lane.b32.xlu1 %v2569_v59, %s2750_s5 }
 0x99a   : > { %v2566_v17 = vpop.permute.xlu0 %2565 }
 0x99b   : > { %v2568_v18 = vunpack.i.h.bf16 %v2566_v17  ;;  %v2567_v19 = vunpack.i.l.bf16 %v2566_v17 }
 0x99c   : > { %v2571_v22 = vpop.permute.xlu1 %2570 }
 0x99d   : > { %v1641_v23 = vsel %vm1639_vm9, %v1638_v20, %v2568_v18  ;;  %v1640_v26 = vsel %vm1639_vm9, %v1637_v21, %v2567_v19  ;;  %v2573_v27 = vunpack.i.h.bf16 %v2571_v22  ;;  %v2572_v28 = vunpack.i.l.bf16 %v2571_v22 }
 0x99e   : > { %v924_v21 = vstv %s923_s19 }
 0x99f   : > { %v1644_v29 = vsel %vm1642_vm10, %v1641_v23, %v2573_v27  ;;  %v1643_v32 = vsel %vm1642_vm10, %v1640_v26, %v2572_v28 }
 0x9a0   : > { %v1645_v35 = vpack.c.bf16 %v1644_v29, %v1643_v32 }
 0x9a2   : > { %2444 = vmatmul.mubr.msk.bf16.vlgmr.msra.gmra.mrb[16].mxu0 %vm827_vm4, %v1645_v35  ;;  %v3195_v35 = vsub.s32 %v3055_v33, %v3057_v34 }
 0x9a3   : > { %2463 = vmatprep.mubr.msk.bf16.mxu0 %vm2741_vm5, %v2740_v37  ;;  %2456 = vmatpush3.bf16.msra.mxu0 %v2582_v55  ;;  %v2289_v55 = vld [vmem:[%s3337_s1] ss:$0 sm:$0xff] (!%p2288_p2) }
 0x9a4   : > { %2457 = vmatprep.subr.bf16.mxu0 %v2740_v37 }
 0x9a7   : > { %2458 = vmatpush3.bf16.msra.mxu0 %v2583_v58 }
 0x9a8   : > { %2459 = vmatprep.subr.bf16.mxu0 %v2740_v37 }
 0x9ab   : > { %2460 = vmatpush3.bf16.msra.mxu0 %v2584_v60 }
 0x9ac   : > { %2461 = vmatprep.subr.bf16.mxu0 %v2740_v37 }
 0x9af   : > { %2462 = vmatpush3.bf16.msra.mxu0 %v2585_v0 }
 0xa75   : > { %v1699_v52 = vpop.f32.mrb[16].mxu0 }
 0xa76   : > { %v3157_v39 = vadd.f32 %v1699_v52, %v2961_v24  ;;  %v2445_v48 = vpop.f32.mrb[17].mxu0  ;;  %v2580_v24 = vld [vmem:[%s2909_s23] sm:$0xff]  }
 0xa77   : > { %v1702_v36 = vpop.f32.mrb[18].mxu0  ;;  %2448 = vmatpush3.bf16.msra.mxu1 %v2580_v24 }
 0xa78   : > { %v3160_v8 = vadd.f32 %v1702_v36, %v2963_v25  ;;  %v2446_v38 = vpop.f32.mrb[19].mxu0  ;;  %v1709_v40 = vmul.f32 %v3157_v39, %v3157_v39  ;;  %2449 = vmatprep.subr.bf16.mxu1 %v2740_v37 }
 0xa7a   : > { %v1711_v31 = vsel %vm827_vm4, %v1709_v40, 0.0  ;;  %v1710_v41 = vmul.f32 %v3160_v8, %v3160_v8 }
 0xa7b   : > { %1712 = vadd.xlane.f32.xlu0 %v1711_v31  ;;  %2450 = vmatpush3.bf16.msra.mxu1 %v2581_v42 }
 0xa7c   : > { %v1714_v12 = vsel %vm827_vm4, %v1710_v41, 0.0 }
 0xa7d   : > { %1715 = vadd.xlane.f32.xlu1 %v1714_v12 }
 0xb08   : > { %v1713_v25 = vpop.xlane.xlu0 %1712 }
 0xb09   : > { %v1717_v30 = vmul.f32 0.03125, %v1713_v25 }
 0xb0a   : > { %v1716_v43 = vpop.xlane.xlu1 %1715 }
 0xb0b   : > { %v1719_v44 = vadd.f32 1e-06, %v1717_v30  ;;  %v1718_v45 = vmul.f32 0.03125, %v1716_v43  ;;  %v2755_v43 = vmov (!%p2288_p2), 0.0  }
 0xb0c   : > { %2467 = vmatprep.subr.bf16.mxu0 (!%p2288_p2), %v2755_v43 }
 0xb0d   : > { %2622 = vrsqrt.f32 %v1719_v44  ;;  %v1720_v46 = vadd.f32 1e-06, %v1718_v45  ;;  %v1990_v44 = vld [vmem:[%s3336_s25] sm:$0xff] (!%p2288_p2)  ;;  %v2757_v45 = vmov (!%p2288_p2), 0  }
 0xb0f   : > { %2624 = vrsqrt.f32 %v1720_v46 }
 0xb17   : > { %v2623_v47 = vpop.eup %2622 }
 0xb18   : > { %v1723_v49 = vmul.f32 %v2623_v47, %v3157_v39 }
 0xb19   : > { %v2625_v50 = vpop.eup %2624 }
 0xb1a   : > { %v1724_v51 = vmul.f32 %v2625_v50, %v3160_v8  ;;  %v1731_v63 = vmul.f32 %v2277_v61, %v1723_v49 }
 0xb1c   : > { %v1732_v53 = vmul.f32 %v2277_v61, %v1724_v51 }
 0xb1e   : > { %v1733_v54 = vpack.c.bf16 %v1732_v53, %v1731_v63 }
 0xb20   : > { %2452 = vmatmul.mubr.msk.bf16.vlgmr.msra.gmra.mrb[24].mxu1 %vm827_vm4, %v1733_v54 }
 0xbf3   : > { %v1787_v2 = vpop.f32.mrb[24].mxu1 }
 0xbf4   : > { %1810 = vrot.lane.b32.xlu0 %v1787_v2, %s2743_s2  ;;  %v2453_v3 = vpop.f32.mrb[25].mxu1  ;;  %v2281_v37 = vmul.f32 -1.442695, %v1787_v2 }
 0xbf5   : > { %v1790_v4 = vpop.f32.mrb[26].mxu1 }
 0xbf6   : > { %1812 = vrot.lane.b32.xlu1 %v1790_v4, %s2743_s2  ;;  %v2454_v6 = vpop.f32.mrb[27].mxu1  ;;  %v2282_v7 = vmul.f32 -1.442695, %v1790_v4  ;;  %2626 = vpow2.f32 %v2281_v37  ;;  %v1991_v37 = vld [vmem:[%s3336_s25 + $0x8] sm:$0xff] (!%p2288_p2) }
 0xbf8   : > { %915 = vrot.lane.b32.xlu0 %v913_v5, %s2754_s24  ;;  %2628 = vpow2.f32 %v2282_v7 }
 0xbfa   : > { %917 = vrot.lane.b32.xlu1 %v914_v62, %s2754_s24 }
 0xc00   : > { %v2627_v9 = vpop.eup %2626 }
 0xc01   : > { %v1800_v11 = vadd.f32 1.0, %v2627_v9 }
 0xc02   : > { %v2629_v10 = vpop.eup %2628 }
 0xc03   : > { %v1801_v59 = vadd.f32 1.0, %v2629_v10  ;;  %2630 = vrcp.f32 %v1800_v11 }
 0xc05   : > { %2632 = vrcp.f32 %v1801_v59 }
 0xc0d   : > { %v2631_v13 = vpop.eup %2630 }
 0xc0e   : > { %v1806_v16 = vmul.f32 %v2631_v13, %v1787_v2 }
 0xc0f   : > { %v2633_v14 = vpop.eup %2632 }
 0xc10   : > { %v1807_v17 = vmul.f32 %v2633_v14, %v1790_v4 }
 0xc66   : > { %v1811_v15 = vpop.permute.xlu0 %1810 }
 0xc67   : > { %v1816_v19 = vmul.f32 %v1811_v15, %v1806_v16 }
 0xc68   : > { %v1813_v18 = vpop.permute.xlu1 %1812 }
 0xc69   : > { %v1817_v20 = vmul.f32 %v1813_v18, %v1807_v17 }
 0xc6a   : > { %v916_v22 = vpop.permute.xlu0 %915 }
 0xc6b   : > { %v1818_v23 = vpack.c.bf16 %v1817_v20, %v1816_v19  ;;  %v921_v26 = vadd.f32 %v916_v22, %v3012_v57 }
 0xc6c   : > { %v918_v27 = vpop.permute.xlu1 %917 }
 0xc6d   : > { %v925_v28 = vadd.f32 %v924_v21, %v921_v26  ;;  %v922_v29 = vadd.f32 %v3010_v56, %v918_v27  ;;  %2464 = vmatmul.mubr.msk.bf16.vlgmr.msra.gmra.mrb[20].mxu0 %vm1851_vm11, %v1818_v23 }
 0xc6e   : > { %2471 = vmatprep.mubr.msk.bf16.mxu0 (!%p2288_p2), %vm2756_vm14, %v2755_v43 }
 0xc6f   : > { %v926_v32 = vadd.f32 %v924_v21, %v922_v29  ;;  %930 = vperm.xlu0 %2574, %v925_v28  }
 0xc71   : > { %933 = vperm.xlu1 %2575, %v926_v32  }
 0xc73   : > { %2634 = vset.pattern.permute.xlu0 (!%p2288_p2), %v2757_v45 }
 0xc75   : > { %2635 = vset.pattern.permute.xlu1 (!%p2288_p2), %v2757_v45 }
 0xcee   : > { %v931_v52 = vpop.permute.xlu0 %930 }
 0xcef   : > { %v940_v36 = vrot.slane %v931_v52, %v3195_v35 }
 0xcf0   : > { %v934_v48 = vpop.permute.xlu1 %933 }
 0xcf1   : > { %v944_v56 = vrot.slane %v934_v48, %v3195_v35 }
 0xcf3   : > { %v946_v57 = vsel %vm945_vm12, %v944_v56, %v940_v36 }
 0xcf4   : > { %951 = vst.msk [vmem:[%s949_s17] sm:$0x3] %vm950_vm13, %v946_v57 }
 0xd3f   : > { %1903 = sbr.rel (%p2288_p2) target bundleno = 4389 (0x1125), region = 100 }
 0xd40   : > { %v1889_v38 = vpop.f32.mrb[20].mxu0 }
 0xd41   : > { %v1896_v34 = vadd.f32 %v1889_v38, %v3157_v39  ;;  %v2465_v40 = vpop.f32.mrb[21].mxu0  ;;  %v2636_v39 = vld [vmem:[%s3335_s26] sm:$0xff] (!%p2288_p2)  }
 0xd42   : > { %v1892_v31 = vpop.f32.mrb[22].mxu0  ;;  %2468 = vmatpush3.bf16.msra.mxu0 (!%p2288_p2), %v2636_v39 }
 0xd43   : > { %1898 = vst.msk [vmem:[#allocation5] sm:$0xff] %vm827_vm4, %v1896_v34  ;;  %v1897_v41 = vadd.f32 %v1892_v31, %v3160_v8  ;;  %v2466_v12 = vpop.f32.mrb[23].mxu0  ;;  %v1905_v24 = vmul.f32 (!%p2288_p2), %v1896_v34, %v1896_v34  ;;  %2469 = vmatprep.subr.bf16.mxu0 (!%p2288_p2), %v2755_v43  ;;  %v2637_v8 = vld [vmem:[%s3335_s26 + $0x8] sm:$0xff] (!%p2288_p2)  }
 0xd45   : > { %1899 = vst.msk [vmem:[#allocation5 + $0x8] sm:$0xff] %vm827_vm4, %v1897_v41  ;;  %v1906_v42 = vmul.f32 (!%p2288_p2), %v1897_v41, %v1897_v41  ;;  %v1907_v25 = vsel (!%p2288_p2), %vm827_vm4, %v1905_v24, 0.0 }
 0xd46   : > { %1908 = vadd.xlane.f32.xlu0 %v1907_v25  ;;  %2470 = vmatpush3.bf16.msra.mxu0 %v2637_v8 }
 0xd47   : > { %v1910_v30 = vsel %vm827_vm4, %v1906_v42, 0.0 }
 0xd4a   : > { %1911 = vadd.xlane.f32.xlu0 %v1910_v30 }
 0xd60   : > { %2018 = vperm.xlu0 %2634, %v1990_v44  }
 0xdd3   : > { %v1909_v46 = vpop.xlane.xlu0 %1908 }
 0xdd4   : > { %v1913_v47 = vmul.f32 0.03125, %v1909_v46 }
 0xdd6   : > { %v1915_v49 = vadd.f32 1e-06, %v1913_v47 }
 0xdd7   : > { %v1912_v50 = vpop.xlane.xlu0 %1911 }
 0xdd8   : > { %2638 = vrsqrt.f32 %v1915_v49  ;;  %v1914_v61 = vmul.f32 0.03125, %v1912_v50 }
 0xdda   : > { %v1916_v51 = vadd.f32 1e-06, %v1914_v61 }
 0xddc   : > { %2640 = vrsqrt.f32 %v1916_v51 }
 0xddf   : > { %v2019_v14 = vpop.permute.xlu0 %2018 }
 0xde0   : > { %vm2023_vm0 = vcmp.eq.s32.totalorder %v3055_v33, %v2019_v14 }
 0xde2   : > { %v2639_v63 = vpop.eup %2638 }
 0xde3   : > { %v1919_v53 = vmul.f32 %v2639_v63, %v1896_v34 }
 0xde5   : > { %v1927_v60 = vmul.f32 %v2289_v55, %v1919_v53 }
 0xde6   : > { %v2641_v54 = vpop.eup %2640 }
 0xde7   : > { %v1920_v58 = vmul.f32 %v2641_v54, %v1897_v41 }
 0xde9   : > { %v1928_v0 = vmul.f32 %v2289_v55, %v1920_v58 }
 0xdeb   : > { %v1929_v1 = vpack.c.bf16 %v1928_v0, %v1927_v60 }
 0xded   : > { %2472 = vmatmul.mubr.msk.bf16.vlgmr.msra.gmra.mrb[0].mxu0 %vm827_vm4, %v1929_v1  ;;  %vm2080_vm4 = vcmask 0  }
 0xec0   : > { %v1983_v2 = vpop.f32.mrb[0].mxu0 }
 0xec1   : > { %v2473_v3 = vpop.f32.mrb[1].mxu0  ;;  %v1993_v4 = vsel %vm1992_vm15, %v1983_v2, -inf  ;;  %v2027_v15 = vrot.slane %v1983_v2, 7 }
 0xec2   : > { %1994 = vmax.xlane.f32.xlu1 %v1993_v4  ;;  %v1986_v5 = vpop.f32.mrb[2].mxu0 }
 0xec3   : > { %v2474_v6 = vpop.f32.mrb[3].mxu0  ;;  %v1996_v62 = vsel %vm1992_vm15, %v1986_v5, -inf  ;;  %v2031_v19 = vsel %vm2023_vm0, %v2027_v15, 0.0  ;;  %v2028_v21 = vrot.slane %v1986_v5, 7 }
 0xec4   : > { %v2034_v22 = vsel %vm2033_vm1, %v2031_v19, 0.0 }
 0xec6   : > { %1997 = vmax.xlane.f32.xlu1 %v1996_v62 }
 0xed7   : > { %2021 = vperm.xlu1 %2635, %v1991_v37  }
 0xf4f   : > { %v1995_v7 = vpop.xlane.xlu1 %1994 }
 0xf50   : > { %v1999_v9 = vsub.f32 %v1983_v2, %v1995_v7 }
 0xf52   : > { %v2001_v10 = vmul.f32 1.442695, %v1999_v9 }
 0xf53   : > { %v1998_v11 = vpop.xlane.xlu1 %1997 }
 0xf54   : > { %2642 = vpow2.f32 %v2001_v10  ;;  %v2000_v59 = vsub.f32 %v1986_v5, %v1998_v11 }
 0xf56   : > { %v2003_v13 = vmul.f32 1.442695, %v2000_v59 }
 0xf57   : > { %v2022_v17 = vpop.permute.xlu1 %2021 }
 0xf58   : > { %2644 = vpow2.f32 %v2003_v13  ;;  %vm2024_vm2 = vcmp.eq.s32.totalorder %v3055_v33, %v2022_v17 }
 0xf59   : > { %v2032_v26 = vsel %vm2024_vm2, %v2028_v21, 0.0 }
 0xf5a   : > { %v2037_v27 = vsel %vm2033_vm1, %v2032_v26, 0.0 }
 0xf5e   : > { %v2643_v16 = vpop.eup %2642 }
 0xf5f   : > { %v2005_v18 = vsel %vm1992_vm15, %v2643_v16, 0.0 }
 0xf60   : > { %2006 = vadd.xlane.f32.xlu1 %v2005_v18 }
 0xf62   : > { %v2645_v20 = vpop.eup %2644 }
 0xf63   : > { %v2008_v23 = vsel %vm1992_vm15, %v2645_v20, 0.0 }
 0xf64   : > { %2035 = vadd.xlane.f32.xlu1 %v2034_v22  ;;  %2009 = vadd.xlane.f32.xlu0 %v2008_v23 }
 0xf68   : > { %2038 = vadd.xlane.f32.xlu1 %v2037_v27 }
 0xfed   : > { %v2007_v28 = vpop.xlane.xlu1 %2006 }
 0xfee   : > { %2646 = vlog2.f32 %v2007_v28 }
 0xff1   : > { %v2010_v29 = vpop.xlane.xlu0 %2009  ;;  %v2036_v32 = vpop.xlane.xlu1 %2035 }
 0xff2   : > { %2648 = vlog2.f32 %v2010_v29  ;;  %v2042_v56 = vrot.slane %v2036_v32, 1 }
 0xff5   : > { %v2039_v57 = vpop.xlane.xlu1 %2038 }
 0xff6   : > { %v2043_v31 = vrot.slane %v2039_v57, 1 }
 0xff8   : > { %v2647_v52 = vpop.eup %2646 }
 0xff9   : > { %v2012_v48 = vmul.f32 0.6931472, %v2647_v52 }
 0xffb   : > { %v2015_v36 = vadd.f32 %v2012_v48, %v1995_v7 }
 0xffc   : > { %v2649_v33 = vpop.eup %2648 }
 0xffd   : > { %v2014_v38 = vmul.f32 0.6931472, %v2649_v33  ;;  %v2046_v34 = vsub.f32 %v2015_v36, %v2042_v56 }
 0xfff   : > { %v2016_v40 = vadd.f32 %v2014_v38, %v1998_v11  ;;  %2053 = vperm.xlu1 %2635, %v2046_v34  }
0x1001   : > { %v2047_v41 = vsub.f32 %v2016_v40, %v2043_v31 }
0x1003   : > { %2056 = vperm.xlu0 %2634, %v2047_v41  }
0x107e   : > { %v2054_v12 = vpop.permute.xlu1 %2053 }
0x107f   : > { %v2061_v42 = vrot.slane %v2054_v12, %v3195_v35 }
0x1082   : > { %v2057_v24 = vpop.permute.xlu0 %2056 }
0x1083   : > { %v2065_v25 = vrot.slane %v2057_v24, %v3195_v35 }
0x1085   : > { %v2066_v30 = vsel %vm945_vm12, %v2065_v25, %v2061_v42 }
0x1086   : > { %v2068_v39 = vsel %vm950_vm13, %v2066_v30, 0.0 }
0x1087   : > { %2069 = vadd.xlane.f32.xlu1 %v2068_v39 }
0x1114   : > { %v2070_v43 = vpop.xlane.xlu1 %2069 }
0x1115   : > { %v2072_v8 = vsel %vm2071_vm3, %v2070_v43, 0.0 }
0x1116   : > { %v2073_v44 = vrot.slane %v2072_v8, 4 }
0x1118   : > { %v2074_v45 = vadd.f32 %v2073_v44, %v2072_v8 }
0x111a   : > { %v2075_v46 = vrot.slane %v2074_v45, 2 }
0x111c   : > { %v2076_v47 = vadd.f32 %v2075_v46, %v2074_v45 }
0x111e   : > { %v2077_v49 = vrot.slane %v2076_v47, 1 }
0x1120   : > { %v2078_v50 = vadd.f32 %v2077_v49, %v2076_v47 }
0x1122   : > { %v2079_v61 = vmul.f32 0.071428575, %v2078_v50 }
0x1124   : > { %2081 = vst.msk [vmem:[#allocation6] sm:$0x1] %vm2080_vm4, %v2079_v61 }
0x1125 PF: > { %p2517_p3 = scmp.eq.s32.totalorder %s2867_s30, 1  ;;  %s2758_s19 = smov [#allocation5]  }
0x1126   : > { %s2088_s20 = sshll.u32 %s2758_s19, 4  ;;  %s2089_s20 = int_to_ptr.vmem [resolvable:$true] %s2088_s20 }
0x1127   : > { %s2665_s0 = scalar_lea.vmem %s2089_s20, 256  ;;  %p2672_p7 = scmp.lt.s32.totalorder %s2089_s20, %s2089_s20 }
0x1128   : > { %p2666_p4 = scmp.ne.s32.totalorder %s2089_s20, %s2665_s0  ;;  %p2673_p8 = scmp.lt.s32.totalorder %s2665_s0, %s2665_s0 }
0x112a   : > { %p2667_p5 = pnand %p2666_p4, %p2517_p3  ;;  %p2674_p9 = por %p2673_p8, %p2672_p7 }
0x112c   : > { %p2668_p6 = pneg %p2667_p5 }
0x112e   : > { %p2675_p10 = pnand %p2674_p9, %p2668_p6 }
0x1130   : > { %2678 = shalt.err (!%p2675_p10)
}
0x1131   : > { %s3338_s27 = sld [smem:[#allocation21_spill]] }
0x1137   : > { %s2679_s4 = scalar_lea.hbm %s3338_s27, 256 }
0x1138   : > { %p2680_p11 = scmp.ne.s32.totalorder %s3338_s27, %s2679_s4  ;;  %p2685_p0 = scmp.lt.u32.totalorder %s2679_s4, %s3338_s27 }
0x113a   : > { %p2681_p12 = pnand %p2680_p11, %p2517_p3 }
0x113c   : > { %p2682_p13 = pneg %p2681_p12 }
0x113e   : > { %p2687_p1 = pnand %p2685_p0, %p2682_p13 }
0x1140   : > { %2690 = shalt.err (!%p2687_p1)
}
0x1141   : > { %s2759_s5 = smov 128   ;;  %s2760_s23 = smov [#allocation6]  }
0x1142   : > { %2504 = dma.vmem_to_hbm [thread:$0]  (%p2517_p3), %s2089_s20, 256, %s3338_s27, [#allocation3], %s2759_s5, %s2759_s5, %s2751_s10  }
0x1143   : > { %s2105_s24 = sshll.u32 %s2760_s23, 4  ;;  %s2106_s24 = int_to_ptr.vmem [resolvable:$true] %s2105_s24 }
0x1144   : > { %s2691_s19 = scalar_lea.vmem %s2106_s24, 16  ;;  %s2697_s0 = scalar_lea.vmem %s2106_s24, 32 }
0x1145   : > { %p2692_p2 = scmp.ne.s32.totalorder %s2106_s24, %s2691_s19  ;;  %p2698_p6 = scmp.lt.s32.totalorder %s2106_s24, %s2106_s24 }
0x1146   : > { %p2699_p7 = scmp.lt.s32.totalorder %s2697_s0, %s2691_s19 }
0x1147   : > { %p2693_p4 = pnand %p2692_p2, %p2517_p3 }
0x1148   : > { %p2700_p8 = por %p2699_p7, %p2698_p6 }
0x1149   : > { %p2694_p5 = pneg %p2693_p4 }
0x114b   : > { %p2701_p9 = pnand %p2700_p8, %p2694_p5 }
0x114d   : > { %2704 = shalt.err (!%p2701_p9)
}
0x114e   : > { %s3339_s4 = sld [smem:[#allocation22_spill]] }
0x1154   : > { %s2705_s3 = scalar_lea.hbm %s3339_s4, 16 }
0x1155   : > { %p2706_p10 = scmp.ne.s32.totalorder %s3339_s4, %s2705_s3  ;;  %p2711_p13 = scmp.lt.u32.totalorder %s2705_s3, %s3339_s4 }
0x1157   : > { %p2707_p11 = pnand %p2706_p10, %p2517_p3 }
0x1159   : > { %p2708_p12 = pneg %p2707_p11 }
0x115b   : > { %p2713_p0 = pnand %p2711_p13, %p2708_p12 }
0x115d   : > { %2716 = shalt.err (!%p2713_p0)
}
0x115e   : > { %2506 = dma.vmem_to_hbm [thread:$0]  (%p2517_p3), %s2106_s24, 16, %s3339_s4, [#allocation7]  }
0x115f   : > { %2726 = dma.done.wait (%p2517_p3), [#allocation3], 256  }
0x1160   : > { %2728 = vsyncadd (%p2517_p3), [#allocation3], 4294967040 }
0x1161   : > { %2730 = dma.done.wait (%p2517_p3), [#allocation7], 16  }
0x1162   : > { %2732 = vsyncadd (%p2517_p3), [#allocation7], 4294967280 }
0x1163 PF: > { %s3340_s29 = sld [smem:[#allocation11_spill]] }
0x1169   : > { %s33_s0 = sadd.s32 1, %s3340_s29  }
0x116a   : > { %p30_p1 = scmp.ge.s32.totalorder %s33_s0, 4  }
0x116c   :  { %32 = sbr.rel (!%p30_p1) target bundleno = 15 (0xf), region = 163 }
0x1173   :  { %2125 = vsyncpa [#allocation3], 1 }
0x1174   :  { %2127 = vsyncpa [#allocation3 + $0x1], 1 }
0x1175   :  { %2128 = vsyncpa [#allocation7], 1 }
0x1176   :  { %2129 = vsyncpa [#allocation4], 1 }
0x1177   :  { %2131 = vsyncpa [#allocation4 + $0x1], 1 }

</bundles_post_ra>
